<compile_context>
chip_gen: v7x
topology: tpu7x:2x2x1
jax: 0.10.0
libtpu: 0.0.40
codegen_flags: <defaults>
</compile_context>

<pallas_src>
import numpy as np

import jax
import jax.numpy as jnp
from jax.experimental import pallas as pl
from jax.experimental.pallas import tpu as pltpu

# TILE cap is problem-size limited here (conv1 Mp=1920 at N=2); for large batch raise
# toward 2048 on v5e/v6e and ~1024 on v7x (smaller VMEM) — always a multiple of 128.
_MAX_TILE = 512


# ------------------------------ Pallas kernels ------------------------------ #

def conv3x3_pool2_relu_kernel(taps_ref, w_ref, b_ref, o_ref):
    """Fused valid 3x3 conv + 2x2/2 max-pool + ReLU, one grid step = TILE pooled pixels.

    taps_ref: (9*Cin, 4*TILE)  im2col taps; the 4 TILE-wide slabs are the 4 pool offsets
    w_ref   : (Cout, 9*Cin)    conv weight, contraction index = (kh*3+kw)*Cin + cin
    b_ref   : (Cout, 1)
    o_ref   : (Cout, TILE)     pooled-output pixels for this grid step (lane-dense)
    """
    tile = o_ref.shape[1]
    acc = jnp.dot(w_ref[...], taps_ref[...],
                  preferred_element_type=jnp.float32)            # (Cout, 4*TILE)
    # 2x2 max-pool: elementwise max over the four lane-tile-aligned TILE-wide slabs.
    p0 = jnp.maximum(acc[:, 0 * tile:1 * tile], acc[:, 1 * tile:2 * tile])
    p1 = jnp.maximum(acc[:, 2 * tile:3 * tile], acc[:, 3 * tile:4 * tile])
    # Bias hoisted out of the pooling max, then ReLU.
    o_ref[...] = jnp.maximum(jnp.maximum(p0, p1) + b_ref[...], 0.0)


def mlp_kernel(x_ref, w1_ref, b1_ref, w2_ref, b2_ref, w3_ref, b3_ref, o_ref):
    """fc1 + ReLU -> fc2 + ReLU -> out (three chained MXU dots, all lane-padded)."""
    h = jnp.dot(x_ref[...], w1_ref[...],
                preferred_element_type=jnp.float32) + b1_ref[...]
    h = jnp.maximum(h, 0.0)
    h = jnp.dot(h, w2_ref[...],
                preferred_element_type=jnp.float32) + b2_ref[...]
    h = jnp.maximum(h, 0.0)
    o_ref[...] = jnp.dot(h, w3_ref[...],
                         preferred_element_type=jnp.float32) + b3_ref[...]


# -------------------------------- wrappers ---------------------------------- #

def conv_pool_relu(taps, w2d, b, mp, tile, grid):
    cout, kdim = w2d.shape
    return pl.pallas_call(
        conv3x3_pool2_relu_kernel,
        out_shape=jax.ShapeDtypeStruct((cout, mp), jnp.float32),
        grid=(grid,),
        in_specs=[
            pl.BlockSpec((kdim, 4 * tile), lambda j: (0, j)),   # taps: per-tile slabs
            pl.BlockSpec((cout, kdim), lambda j: (0, 0)),        # weight: grid-invariant
            pl.BlockSpec((cout, 1), lambda j: (0, 0)),           # bias:   grid-invariant
        ],
        out_specs=pl.BlockSpec((cout, tile), lambda j: (0, j)),  # lane-dense output
        compiler_params=pltpu.CompilerParams(
            dimension_semantics=("parallel",)),
    )(taps, w2d, b)


def mlp(x, fc1, fc2, out):
    (w1, b1), (w2, b2), (w3, b3) = fc1, fc2, out
    vmem = pl.BlockSpec(memory_space=pltpu.MemorySpace.VMEM)
    return pl.pallas_call(
        mlp_kernel,
        out_shape=jax.ShapeDtypeStruct((x.shape[0], w3.shape[1]), jnp.float32),
        in_specs=[vmem] * 7,
        out_specs=pl.BlockSpec(memory_space=pltpu.MemorySpace.VMEM),
    )(x, w1, b1, w2, b2, w3, b3)


# ----------------------- static (trace-time) index maps ---------------------- #

def _round_up(a, b):
    return -(-a // b) * b


def _conv_layer_plan(cin, n, h, w, src_flat_index):
    """Static int32 gather map for the (9*Cin, grid*4*TILE) tap matrix.

    Tap column layout (grouped per grid tile):
      col = j*4*TILE + d*TILE + t   with pooled pixel m = j*TILE + t, pool offset d.
    Tap row layout: r = (kh*3+kw)*Cin + c  (matches the host-reshaped conv weight).
    Pad columns (m >= M) just point at element 0 (finite garbage, never read later).
    """
    hc, wc = h - 2, w - 2
    hp, wp = hc // 2, wc // 2
    m = n * hp * wp
    tile = min(_MAX_TILE, _round_up(m, 128))
    grid = _round_up(m, tile) // tile
    mp = grid * tile

    r = np.arange(9 * cin)
    kidx = r // cin
    kh = (kidx // 3)[:, None]
    kw = (kidx % 3)[:, None]
    c = (r % cin)[:, None]

    col = np.arange(grid * 4 * tile)
    j = col // (4 * tile)
    rem = col % (4 * tile)
    d = rem // tile
    t = rem % tile
    m_idx = j * tile + t
    valid = (m_idx < m)[None, :]
    m_clip = np.minimum(m_idx, m - 1)
    nn = (m_clip // (hp * wp))[None, :]
    s = m_clip % (hp * wp)
    ph = (s // wp)[None, :]
    pw = (s % wp)[None, :]
    dh = (d // 2)[None, :]
    dw = (d % 2)[None, :]

    hh = 2 * ph + dh + kh
    ww = 2 * pw + dw + kw
    idx = src_flat_index(c, nn, hh, ww)
    idx = np.where(valid, idx, 0).astype(np.int32)
    return idx, tile, grid, mp, hp, wp


def _flatten_plan(n, cout, hp, wp, mp_prev, kpad):
    """Static (N, kpad) gather map: flat[n, c*hp*wp + s] = o[c, n*hp*wp + s]."""
    hpwp = hp * wp
    feat = cout * hpwp
    k = np.arange(kpad)
    cidx = np.minimum(k // hpwp, cout - 1)
    s = k % hpwp
    fidx = cidx[None, :] * mp_prev + np.arange(n)[:, None] * hpwp + s[None, :]
    fidx = np.where(k[None, :] < feat, fidx, 0).astype(np.int32)
    return fidx


# --------------------------------- forward ----------------------------------- #

def cnn_forward(x_nchw, params):
    n, cin, h, w = x_nchw.shape
    x = x_nchw                                                   # raw NCHW, no transpose
    # Flat index of element [c, n, h, w] inside the current source array.
    src_index = lambda c, nn, hh, ww, C=cin, H=h, W=w: ((nn * C + c) * H + hh) * W + ww

    for name in ("conv1", "conv2", "conv3"):
        w2d, b = params[name]
        cout = w2d.shape[0]
        idx, tile, grid, mp, hp, wp = _conv_layer_plan(cin, n, h, w, src_index)
        taps = jnp.take(x, jnp.asarray(idx))                     # one gather -> tap matrix
        x = conv_pool_relu(taps, w2d, b, mp, tile, grid)         # (Cout, Mp) lane-dense
        # Next layer reads the raw kernel output: column = n*hp*wp + h*wp + w, row = c.
        src_index = lambda c, nn, hh, ww, MP=mp, HP=hp, WP=wp: \
            c * MP + nn * (HP * WP) + hh * WP + ww
        cin, h, w = cout, hp, wp

    # PyTorch flatten (NCHW): feature index = c*(hp*wp) + h*wp + w; one gather, padded
    # to the fc1 lane width (extra features point at element 0, zeroed by fc1 pad rows).
    kpad = params["fc1"][0].shape[0]
    fidx = _flatten_plan(n, cin, h, w, x.shape[1], kpad)
    flat = jnp.take(x, jnp.asarray(fidx))                        # (N, kpad)
    y = mlp(flat, params["fc1"], params["fc2"], params["out"])   # (N, 128) lane-dense
    return y[:, :8]


# ----------------------------- parameter creation ---------------------------- #

def init_params(key):
    def uniform(k, shape, fan_in):
        bound = 1.0 / np.sqrt(float(fan_in))
        return jax.random.uniform(k, shape, jnp.float32, -bound, bound)

    keys = jax.random.split(key, 12)
    params = {}
    ki = 0
    for name, cin, cout in (("conv1", 4, 6), ("conv2", 6, 12), ("conv3", 12, 24)):
        w_oihw = uniform(keys[ki], (cout, cin, 3, 3), cin * 9); ki += 1
        bias = uniform(keys[ki], (cout,), cin * 9); ki += 1
        # Kernel layout: (Cout, 9*Cin), contraction index = (kh*3+kw)*Cin + cin.
        w2d = jnp.transpose(w_oihw, (0, 2, 3, 1)).reshape(cout, 9 * cin)
        params[name] = (w2d, bias.reshape(cout, 1))

    def padded_fc(kw_, kb_, fin, fout, fin_pad, fout_pad):
        w = uniform(kw_, (fout, fin), fin)                       # PyTorch (out, in)
        bias = uniform(kb_, (fout,), fin)
        w_p = jnp.zeros((fin_pad, fout_pad), jnp.float32).at[:fin, :fout].set(w.T)
        b_p = jnp.zeros((1, fout_pad), jnp.float32).at[0, :fout].set(bias)
        return w_p, b_p

    # Lane-pad the MLP: 864->896 (in), 200->256, 50->128, 8->128 (zero cols / zero bias).
    params["fc1"] = padded_fc(keys[ki], keys[ki + 1], 24 * 6 * 6, 200, 896, 256); ki += 2
    params["fc2"] = padded_fc(keys[ki], keys[ki + 1], 200, 50, 256, 128); ki += 2
    params["out"] = padded_fc(keys[ki], keys[ki + 1], 50, 8, 128, 128); ki += 2
    return params


if __name__ == "__main__":
    key = jax.random.PRNGKey(0)
    pkey, xkey = jax.random.split(key)
    params = init_params(pkey)
    # NCHW input; 62x62 spatial is implied by the hard-coded 24*6*6 flatten in fc1.
    x = jax.random.normal(xkey, (2, 4, 62, 62), jnp.float32)
    y = jax.jit(cnn_forward)(x, params)
    y = jax.block_until_ready(y)
    assert y.shape == (2, 8), y.shape
    assert bool(jnp.all(jnp.isfinite(y)))
    print("KERNEL_OK")
</pallas_src>

<mosaic_0001>
module attributes {stable_mosaic.version = 11 : i64} {
  func.func private @main(%arg0: i32) attributes {dimension_semantics = [#tpu.dimension_semantics<core_parallel>], iteration_bounds = array<i64: 2>, tpu.core_type = #tpu.core_type<sc_scalar_subcore>, window_params = []} {
    return
  }
}

module attributes {stable_mosaic.version = 11 : i64} {
  func.func private @main(%arg0: i32) attributes {dimension_semantics = [#tpu.dimension_semantics<core_parallel>], iteration_bounds = array<i64: 2>, tpu.core_type = #tpu.core_type<sc_scalar_subcore>, window_params = []} {
    return
  }
}

module attributes {stable_mosaic.version = 11 : i64} {
  func.func @conv3x3_pool2_relu_kernel(%arg0: i32, %arg1: memref<36x2048xf32, #tpu.memory_space<vmem>>, %arg2: memref<6x36xf32, #tpu.memory_space<vmem>>, %arg3: memref<6x1xf32, #tpu.memory_space<vmem>>, %arg4: memref<6x512xf32, #tpu.memory_space<vmem>>) attributes {dimension_semantics = [#tpu.dimension_semantics<parallel>], iteration_bounds = array<i64: 4>, scalar_prefetch = 0 : i64, scratch_operands = 0 : i64, tpu.core_type = #tpu.core_type<tc>, window_params = [{transform_indices = @transform_0, window_bounds = array<i64: 36, 2048>}, {pipeline_mode = #tpu.pipeline_mode<synchronous>, transform_indices = @transform_1, window_bounds = array<i64: 6, 36>}, {pipeline_mode = #tpu.pipeline_mode<synchronous>, transform_indices = @transform_2, window_bounds = array<i64: 6, 1>}, {transform_indices = @transform_3, window_bounds = array<i64: 6, 512>}]} {
    %c0 = arith.constant 0 : index
    %c0_0 = arith.constant 0 : index
    %0 = vector.load %arg2[%c0, %c0_0] : memref<6x36xf32, #tpu.memory_space<vmem>>, vector<6x36xf32>
    %c0_1 = arith.constant 0 : index
    %c0_2 = arith.constant 0 : index
    %1 = vector.load %arg1[%c0_1, %c0_2] : memref<36x2048xf32, #tpu.memory_space<vmem>>, vector<36x2048xf32>
    %cst = arith.constant dense<0.000000e+00> : vector<6x2048xf32>
    %2 = tpu.matmul %0, %1, %cst {dimension_numbers = #tpu.dot_dimension_numbers<[1], [0], [0], [1], [0, 0, 1, 1], [], []>} : vector<6x36xf32>, vector<36x2048xf32>, vector<6x2048xf32> -> vector<6x2048xf32>
    %3 = vector.extract_strided_slice %2 {offsets = [0, 0], sizes = [6, 512], strides = [1, 1]} : vector<6x2048xf32> to vector<6x512xf32>
    %4 = vector.extract_strided_slice %2 {offsets = [0, 512], sizes = [6, 512], strides = [1, 1]} : vector<6x2048xf32> to vector<6x512xf32>
    %5 = arith.maximumf %3, %4 : vector<6x512xf32>
    %6 = vector.extract_strided_slice %2 {offsets = [0, 1024], sizes = [6, 512], strides = [1, 1]} : vector<6x2048xf32> to vector<6x512xf32>
    %7 = vector.extract_strided_slice %2 {offsets = [0, 1536], sizes = [6, 512], strides = [1, 1]} : vector<6x2048xf32> to vector<6x512xf32>
    %8 = arith.maximumf %6, %7 : vector<6x512xf32>
    %9 = arith.maximumf %5, %8 : vector<6x512xf32>
    %c0_3 = arith.constant 0 : index
    %c0_4 = arith.constant 0 : index
    %10 = vector.load %arg3[%c0_3, %c0_4] : memref<6x1xf32, #tpu.memory_space<vmem>>, vector<6x1xf32>
    %11 = vector.broadcast %10 : vector<6x1xf32> to vector<6x512xf32>
    %12 = arith.addf %9, %11 : vector<6x512xf32>
    %cst_5 = arith.constant 0.000000e+00 : f32
    %13 = vector.broadcast %cst_5 : f32 to vector<6x512xf32>
    %14 = arith.maximumf %12, %13 : vector<6x512xf32>
    %c0_6 = arith.constant 0 : index
    %c0_7 = arith.constant 0 : index
    %15 = vector.load %arg4[%c0_6, %c0_7] : memref<6x512xf32, #tpu.memory_space<vmem>>, vector<6x512xf32>
    tpu.vector_store %arg4[%c0_6, %c0_7], %14 {strides = array<i32>} : memref<6x512xf32, #tpu.memory_space<vmem>>, vector<6x512xf32>,
    return
  }
  func.func @transform_0(%arg0: i32) -> (i32, i32) {
    %c0_i32 = arith.constant 0 : i32
    %c0_i32_0 = arith.constant 0 : i32
    return %c0_i32, %arg0 : i32, i32
  }
  func.func @transform_1(%arg0: i32) -> (i32, i32) {
    %c0_i32 = arith.constant 0 : i32
    %c0_i32_0 = arith.constant 0 : i32
    %c0_i32_1 = arith.constant 0 : i32
    return %c0_i32, %c0_i32_0 : i32, i32
  }
  func.func @transform_2(%arg0: i32) -> (i32, i32) {
    %c0_i32 = arith.constant 0 : i32
    %c0_i32_0 = arith.constant 0 : i32
    %c0_i32_1 = arith.constant 0 : i32
    return %c0_i32, %c0_i32_0 : i32, i32
  }
  func.func @transform_3(%arg0: i32) -> (i32, i32) {
    %c0_i32 = arith.constant 0 : i32
    %c0_i32_0 = arith.constant 0 : i32
    return %c0_i32, %arg0 : i32, i32
  }
}

module attributes {stable_mosaic.version = 11 : i64} {
  func.func @conv3x3_pool2_relu_kernel(%arg0: i32, %arg1: memref<54x2048xf32, #tpu.memory_space<vmem>>, %arg2: memref<12x54xf32, #tpu.memory_space<vmem>>, %arg3: memref<12x1xf32, #tpu.memory_space<vmem>>, %arg4: memref<12x512xf32, #tpu.memory_space<vmem>>) attributes {dimension_semantics = [#tpu.dimension_semantics<parallel>], iteration_bounds = array<i64: 1>, scalar_prefetch = 0 : i64, scratch_operands = 0 : i64, tpu.core_type = #tpu.core_type<tc>, window_params = [{transform_indices = @transform_0, window_bounds = array<i64: 54, 2048>}, {pipeline_mode = #tpu.pipeline_mode<synchronous>, transform_indices = @transform_1, window_bounds = array<i64: 12, 54>}, {pipeline_mode = #tpu.pipeline_mode<synchronous>, transform_indices = @transform_2, window_bounds = array<i64: 12, 1>}, {transform_indices = @transform_3, window_bounds = array<i64: 12, 512>}]} {
    %c0 = arith.constant 0 : index
    %c0_0 = arith.constant 0 : index
    %0 = vector.load %arg2[%c0, %c0_0] : memref<12x54xf32, #tpu.memory_space<vmem>>, vector<12x54xf32>
    %c0_1 = arith.constant 0 : index
    %c0_2 = arith.constant 0 : index
    %1 = vector.load %arg1[%c0_1, %c0_2] : memref<54x2048xf32, #tpu.memory_space<vmem>>, vector<54x2048xf32>
    %cst = arith.constant dense<0.000000e+00> : vector<12x2048xf32>
    %2 = tpu.matmul %0, %1, %cst {dimension_numbers = #tpu.dot_dimension_numbers<[1], [0], [0], [1], [0, 0, 1, 1], [], []>} : vector<12x54xf32>, vector<54x2048xf32>, vector<12x2048xf32> -> vector<12x2048xf32>
    %3 = vector.extract_strided_slice %2 {offsets = [0, 0], sizes = [12, 512], strides = [1, 1]} : vector<12x2048xf32> to vector<12x512xf32>
    %4 = vector.extract_strided_slice %2 {offsets = [0, 512], sizes = [12, 512], strides = [1, 1]} : vector<12x2048xf32> to vector<12x512xf32>
    %5 = arith.maximumf %3, %4 : vector<12x512xf32>
    %6 = vector.extract_strided_slice %2 {offsets = [0, 1024], sizes = [12, 512], strides = [1, 1]} : vector<12x2048xf32> to vector<12x512xf32>
    %7 = vector.extract_strided_slice %2 {offsets = [0, 1536], sizes = [12, 512], strides = [1, 1]} : vector<12x2048xf32> to vector<12x512xf32>
    %8 = arith.maximumf %6, %7 : vector<12x512xf32>
    %9 = arith.maximumf %5, %8 : vector<12x512xf32>
    %c0_3 = arith.constant 0 : index
    %c0_4 = arith.constant 0 : index
    %10 = vector.load %arg3[%c0_3, %c0_4] : memref<12x1xf32, #tpu.memory_space<vmem>>, vector<12x1xf32>
    %11 = vector.broadcast %10 : vector<12x1xf32> to vector<12x512xf32>
    %12 = arith.addf %9, %11 : vector<12x512xf32>
    %cst_5 = arith.constant 0.000000e+00 : f32
    %13 = vector.broadcast %cst_5 : f32 to vector<12x512xf32>
    %14 = arith.maximumf %12, %13 : vector<12x512xf32>
    %c0_6 = arith.constant 0 : index
    %c0_7 = arith.constant 0 : index
    %15 = vector.load %arg4[%c0_6, %c0_7] : memref<12x512xf32, #tpu.memory_space<vmem>>, vector<12x512xf32>
    tpu.vector_store %arg4[%c0_6, %c0_7], %14 {strides = array<i32>} : memref<12x512xf32, #tpu.memory_space<vmem>>, vector<12x512xf32>,
    return
  }
  func.func @transform_0(%arg0: i32) -> (i32, i32) {
    %c0_i32 = arith.constant 0 : i32
    %c0_i32_0 = arith.constant 0 : i32
    return %c0_i32, %arg0 : i32, i32
  }
  func.func @transform_1(%arg0: i32) -> (i32, i32) {
    %c0_i32 = arith.constant 0 : i32
    %c0_i32_0 = arith.constant 0 : i32
    %c0_i32_1 = arith.constant 0 : i32
    return %c0_i32, %c0_i32_0 : i32, i32
  }
  func.func @transform_2(%arg0: i32) -> (i32, i32) {
    %c0_i32 = arith.constant 0 : i32
    %c0_i32_0 = arith.constant 0 : i32
    %c0_i32_1 = arith.constant 0 : i32
    return %c0_i32, %c0_i32_0 : i32, i32
  }
  func.func @transform_3(%arg0: i32) -> (i32, i32) {
    %c0_i32 = arith.constant 0 : i32
    %c0_i32_0 = arith.constant 0 : i32
    return %c0_i32, %arg0 : i32, i32
  }
}

module attributes {stable_mosaic.version = 11 : i64} {
  func.func @conv3x3_pool2_relu_kernel(%arg0: i32, %arg1: memref<108x512xf32, #tpu.memory_space<vmem>>, %arg2: memref<24x108xf32, #tpu.memory_space<vmem>>, %arg3: memref<24x1xf32, #tpu.memory_space<vmem>>, %arg4: memref<24x128xf32, #tpu.memory_space<vmem>>) attributes {dimension_semantics = [#tpu.dimension_semantics<parallel>], iteration_bounds = array<i64: 1>, scalar_prefetch = 0 : i64, scratch_operands = 0 : i64, tpu.core_type = #tpu.core_type<tc>, window_params = [{transform_indices = @transform_0, window_bounds = array<i64: 108, 512>}, {pipeline_mode = #tpu.pipeline_mode<synchronous>, transform_indices = @transform_1, window_bounds = array<i64: 24, 108>}, {pipeline_mode = #tpu.pipeline_mode<synchronous>, transform_indices = @transform_2, window_bounds = array<i64: 24, 1>}, {transform_indices = @transform_3, window_bounds = array<i64: 24, 128>}]} {
    %c0 = arith.constant 0 : index
    %c0_0 = arith.constant 0 : index
    %0 = vector.load %arg2[%c0, %c0_0] : memref<24x108xf32, #tpu.memory_space<vmem>>, vector<24x108xf32>
    %c0_1 = arith.constant 0 : index
    %c0_2 = arith.constant 0 : index
    %1 = vector.load %arg1[%c0_1, %c0_2] : memref<108x512xf32, #tpu.memory_space<vmem>>, vector<108x512xf32>
    %cst = arith.constant dense<0.000000e+00> : vector<24x512xf32>
    %2 = tpu.matmul %0, %1, %cst {dimension_numbers = #tpu.dot_dimension_numbers<[1], [0], [0], [1], [0, 0, 1, 1], [], []>} : vector<24x108xf32>, vector<108x512xf32>, vector<24x512xf32> -> vector<24x512xf32>
    %3 = vector.extract_strided_slice %2 {offsets = [0, 0], sizes = [24, 128], strides = [1, 1]} : vector<24x512xf32> to vector<24x128xf32>
    %4 = vector.extract_strided_slice %2 {offsets = [0, 128], sizes = [24, 128], strides = [1, 1]} : vector<24x512xf32> to vector<24x128xf32>
    %5 = arith.maximumf %3, %4 : vector<24x128xf32>
    %6 = vector.extract_strided_slice %2 {offsets = [0, 256], sizes = [24, 128], strides = [1, 1]} : vector<24x512xf32> to vector<24x128xf32>
    %7 = vector.extract_strided_slice %2 {offsets = [0, 384], sizes = [24, 128], strides = [1, 1]} : vector<24x512xf32> to vector<24x128xf32>
    %8 = arith.maximumf %6, %7 : vector<24x128xf32>
    %9 = arith.maximumf %5, %8 : vector<24x128xf32>
    %c0_3 = arith.constant 0 : index
    %c0_4 = arith.constant 0 : index
    %10 = vector.load %arg3[%c0_3, %c0_4] : memref<24x1xf32, #tpu.memory_space<vmem>>, vector<24x1xf32>
    %11 = vector.broadcast %10 : vector<24x1xf32> to vector<24x128xf32>
    %12 = arith.addf %9, %11 : vector<24x128xf32>
    %cst_5 = arith.constant 0.000000e+00 : f32
    %13 = vector.broadcast %cst_5 : f32 to vector<24x128xf32>
    %14 = arith.maximumf %12, %13 : vector<24x128xf32>
    %c0_6 = arith.constant 0 : index
    %c0_7 = arith.constant 0 : index
    %15 = vector.load %arg4[%c0_6, %c0_7] : memref<24x128xf32, #tpu.memory_space<vmem>>, vector<24x128xf32>
    tpu.vector_store %arg4[%c0_6, %c0_7], %14 {strides = array<i32>} : memref<24x128xf32, #tpu.memory_space<vmem>>, vector<24x128xf32>,
    return
  }
  func.func @transform_0(%arg0: i32) -> (i32, i32) {
    %c0_i32 = arith.constant 0 : i32
    %c0_i32_0 = arith.constant 0 : i32
    return %c0_i32, %arg0 : i32, i32
  }
  func.func @transform_1(%arg0: i32) -> (i32, i32) {
    %c0_i32 = arith.constant 0 : i32
    %c0_i32_0 = arith.constant 0 : i32
    %c0_i32_1 = arith.constant 0 : i32
    return %c0_i32, %c0_i32_0 : i32, i32
  }
  func.func @transform_2(%arg0: i32) -> (i32, i32) {
    %c0_i32 = arith.constant 0 : i32
    %c0_i32_0 = arith.constant 0 : i32
    %c0_i32_1 = arith.constant 0 : i32
    return %c0_i32, %c0_i32_0 : i32, i32
  }
  func.func @transform_3(%arg0: i32) -> (i32, i32) {
    %c0_i32 = arith.constant 0 : i32
    %c0_i32_0 = arith.constant 0 : i32
    return %c0_i32, %arg0 : i32, i32
  }
}

module attributes {stable_mosaic.version = 11 : i64} {
  func.func @mlp_kernel(%arg0: memref<2x896xf32, #tpu.memory_space<vmem>>, %arg1: memref<896x256xf32, #tpu.memory_space<vmem>>, %arg2: memref<1x256xf32, #tpu.memory_space<vmem>>, %arg3: memref<256x128xf32, #tpu.memory_space<vmem>>, %arg4: memref<1x128xf32, #tpu.memory_space<vmem>>, %arg5: memref<128x128xf32, #tpu.memory_space<vmem>>, %arg6: memref<1x128xf32, #tpu.memory_space<vmem>>, %arg7: memref<2x128xf32, #tpu.memory_space<vmem>>) attributes {dimension_semantics = [], scalar_prefetch = 0 : i64, scratch_operands = 0 : i64, tpu.core_type = #tpu.core_type<tc>} {
    %c0 = arith.constant 0 : index
    %c0_0 = arith.constant 0 : index
    %0 = vector.load %arg0[%c0, %c0_0] : memref<2x896xf32, #tpu.memory_space<vmem>>, vector<2x896xf32>
    %c0_1 = arith.constant 0 : index
    %c0_2 = arith.constant 0 : index
    %1 = vector.load %arg1[%c0_1, %c0_2] : memref<896x256xf32, #tpu.memory_space<vmem>>, vector<896x256xf32>
    %cst = arith.constant dense<0.000000e+00> : vector<2x256xf32>
    %2 = tpu.matmul %0, %1, %cst {dimension_numbers = #tpu.dot_dimension_numbers<[1], [0], [0], [1], [0, 0, 1, 1], [], []>} : vector<2x896xf32>, vector<896x256xf32>, vector<2x256xf32> -> vector<2x256xf32>
    %c0_3 = arith.constant 0 : index
    %c0_4 = arith.constant 0 : index
    %3 = vector.load %arg2[%c0_3, %c0_4] : memref<1x256xf32, #tpu.memory_space<vmem>>, vector<1x256xf32>
    %4 = vector.broadcast %3 : vector<1x256xf32> to vector<2x256xf32>
    %5 = arith.addf %2, %4 : vector<2x256xf32>
    %cst_5 = arith.constant 0.000000e+00 : f32
    %6 = vector.broadcast %cst_5 : f32 to vector<2x256xf32>
    %7 = arith.maximumf %5, %6 : vector<2x256xf32>
    %c0_6 = arith.constant 0 : index
    %c0_7 = arith.constant 0 : index
    %8 = vector.load %arg3[%c0_6, %c0_7] : memref<256x128xf32, #tpu.memory_space<vmem>>, vector<256x128xf32>
    %cst_8 = arith.constant dense<0.000000e+00> : vector<2x128xf32>
    %9 = tpu.matmul %7, %8, %cst_8 {dimension_numbers = #tpu.dot_dimension_numbers<[1], [0], [0], [1], [0, 0, 1, 1], [], []>} : vector<2x256xf32>, vector<256x128xf32>, vector<2x128xf32> -> vector<2x128xf32>
    %c0_9 = arith.constant 0 : index
    %c0_10 = arith.constant 0 : index
    %10 = vector.load %arg4[%c0_9, %c0_10] : memref<1x128xf32, #tpu.memory_space<vmem>>, vector<1x128xf32>
    %11 = vector.broadcast %10 : vector<1x128xf32> to vector<2x128xf32>
    %12 = arith.addf %9, %11 : vector<2x128xf32>
    %cst_11 = arith.constant 0.000000e+00 : f32
    %13 = vector.broadcast %cst_11 : f32 to vector<2x128xf32>
    %14 = arith.maximumf %12, %13 : vector<2x128xf32>
    %c0_12 = arith.constant 0 : index
    %c0_13 = arith.constant 0 : index
    %15 = vector.load %arg5[%c0_12, %c0_13] : memref<128x128xf32, #tpu.memory_space<vmem>>, vector<128x128xf32>
    %cst_14 = arith.constant dense<0.000000e+00> : vector<2x128xf32>
    %16 = tpu.matmul %14, %15, %cst_14 {dimension_numbers = #tpu.dot_dimension_numbers<[1], [0], [0], [1], [0, 0, 1, 1], [], []>} : vector<2x128xf32>, vector<128x128xf32>, vector<2x128xf32> -> vector<2x128xf32>
    %c0_15 = arith.constant 0 : index
    %c0_16 = arith.constant 0 : index
    %17 = vector.load %arg6[%c0_15, %c0_16] : memref<1x128xf32, #tpu.memory_space<vmem>>, vector<1x128xf32>
    %18 = vector.broadcast %17 : vector<1x128xf32> to vector<2x128xf32>
    %19 = arith.addf %16, %18 : vector<2x128xf32>
    %c0_17 = arith.constant 0 : index
    %c0_18 = arith.constant 0 : index
    %20 = vector.load %arg7[%c0_17, %c0_18] : memref<2x128xf32, #tpu.memory_space<vmem>>, vector<2x128xf32>
    tpu.vector_store %arg7[%c0_17, %c0_18], %19 {strides = array<i32>} : memref<2x128xf32, #tpu.memory_space<vmem>>, vector<2x128xf32>,
    return
  }
}

</mosaic_0001>

<bundles_post_ra>
// kernel: cnn_forward.4
= control target key start
LH: loop header
LB: loop body
LE: loop exit
PB: predicated region body
PF: predicated region fallthrough
CT: control target
= control target key end

     0   :  { %s1320_s12 = smov 0   ;;  %s1322_s13 = smov 0   ;;  %s1666_s0 = inlined_call_operand.vmem [shape: f32[36,8192], index: 0, kind: input, shape index: {}]   ;;  %s1667_s1 = inlined_call_operand.vmem [shape: f32[6,36], index: 1, kind: input, shape index: {}]   ;;  %s1668_s2 = inlined_call_operand.vmem [shape: f32[6,1], index: 2, kind: input, shape index: {}]   ;;  %s1669_s3 = inlined_call_operand.vmem [shape: f32[6,2048], index: 3, kind: output, shape index: {}]  }
   0x1   :  { %s1324_s14 = smov 0  }
   0x2 LB: > { %s1145_s15 = sadd.s32 4294967295, %s1296_s14   ;;  %s1337_s16 = sadd.s32 1, %s1296_s14   ;;  %s1296_s14 = sphi %s1324_s14, %s1672_s14   ;;  %s1292_s13 = sphi %s1322_s13, %s1671_s13   ;;  %s1288_s12 = sphi %s1320_s12, %s1670_s12  }
   0x3   : > { %s17_s17 = ssub.s32 %s1296_s14, %s1337_s16  ;;  %s20_s18 = sadd.s32 1, %s1292_s13 }
   0x4   : > { %p18_p0 = scmp.eq.s32.totalorder %s17_s17, 0  ;;  %p27_p1 = scmp.ne.s32.totalorder %s1292_s13, %s1288_s12 }
   0x5   : > { %p28_p2 = scmp.eq.s32.totalorder %s1296_s14, 0  ;;  %p1148_p4 = scmp.ge.s32.totalorder %s1296_s14, 4 }
   0x6   : > { %s1346_s19 = scalar_select %p18_p0, %s1292_s13, %s20_s18  }
   0x7   : > { %p29_p3 = por %p28_p2, %p27_p1  ;;  %127 = sbr.rel (%p1148_p4) target bundleno = 59 (0x3b), region = 24 }
   0xe   : > { %130 = sbr.rel (!%p29_p3) target bundleno = 59 (0x3b), region = 28  ;;  %s132_s20 = sand.u32 (%p29_p3), 1, %s1292_s13  }
   0xf   : > { %s1180_s21 = sshll.u32 (%p29_p3), %s1296_s14, 7  ;;  %s1245_s22 = smul.u32 (%p29_p3), 640, %s132_s20 }
  0x10   : > { %s1354_s25 = scalar_lea.vmem (%p29_p3), %s1666_s0, %s1180_s21 }
  0x11   : > { %v150_v0 = vld [vmem:[%s1354_s25] sm:$0xff] (%p29_p3)  ;;  %v152_v1 = vld [vmem:[%s1354_s25 + $0x8] sm:$0xff] (%p29_p3)  ;;  %v154_v2 = vld [vmem:[%s1354_s25 + $0x10] sm:$0xff] (%p29_p3)  ;;  %s1362_s26 = scalar_lea.vmem (%p29_p3), [#allocation2], %s1245_s22 }
  0x12   : > { %v156_v3 = vld [vmem:[%s1354_s25 + $0x18] sm:$0xff] (%p29_p3)  ;;  %v158_v4 = vld [vmem:[%s1354_s25 + $0x20] sm:$0xff] (%p29_p3)  ;;  %v160_v5 = vld [vmem:[%s1354_s25 + $0x28] sm:$0xff] (%p29_p3)  ;;  %151 = vst [vmem:[%s1362_s26] sm:$0xff] (%p29_p3), %v150_v0 }
  0x13   : > { %153 = vst [vmem:[%s1362_s26 + $0x8] sm:$0xff] (%p29_p3), %v152_v1  ;;  %155 = vst [vmem:[%s1362_s26 + $0x10] sm:$0xff] (%p29_p3), %v154_v2  ;;  %v162_v6 = vld [vmem:[%s1354_s25 + $0x30] sm:$0xff] (%p29_p3)  ;;  %v164_v7 = vld [vmem:[%s1354_s25 + $0x38] sm:$0xff] (%p29_p3) }
  0x14   : > { %157 = vst [vmem:[%s1362_s26 + $0x18] sm:$0xff] (%p29_p3), %v156_v3  ;;  %159 = vst [vmem:[%s1362_s26 + $0x20] sm:$0xff] (%p29_p3), %v158_v4  ;;  %v166_v8 = vld [vmem:[%s1354_s25 + $0x40] sm:$0xff] (%p29_p3)  ;;  %v168_v9 = vld [vmem:[%s1354_s25 + $0x48] sm:$0xff] (%p29_p3) }
  0x15   : > { %161 = vst [vmem:[%s1362_s26 + $0x28] sm:$0xff] %v160_v5  ;;  %163 = vst [vmem:[%s1362_s26 + $0x30] sm:$0xff] %v162_v6  ;;  %v170_v10 = vld [vmem:[%s1354_s25 + $0x50] sm:$0xff]  ;;  %v172_v11 = vld [vmem:[%s1354_s25 + $0x58] sm:$0xff] }
  0x16   : > { %165 = vst [vmem:[%s1362_s26 + $0x38] sm:$0xff] %v164_v7  ;;  %167 = vst [vmem:[%s1362_s26 + $0x40] sm:$0xff] %v166_v8  ;;  %v174_v12 = vld [vmem:[%s1354_s25 + $0x60] sm:$0xff]  ;;  %v176_v13 = vld [vmem:[%s1354_s25 + $0x68] sm:$0xff] }
  0x17   : > { %169 = vst [vmem:[%s1362_s26 + $0x48] sm:$0xff] %v168_v9  ;;  %171 = vst [vmem:[%s1362_s26 + $0x50] sm:$0xff] %v170_v10  ;;  %v178_v14 = vld [vmem:[%s1354_s25 + $0x70] sm:$0xff]  ;;  %v180_v15 = vld [vmem:[%s1354_s25 + $0x78] sm:$0xff] }
  0x18   : > { %173 = vst [vmem:[%s1362_s26 + $0x58] sm:$0xff] %v172_v11  ;;  %175 = vst [vmem:[%s1362_s26 + $0x60] sm:$0xff] %v174_v12  ;;  %v182_v16 = vld [vmem:[%s1354_s25 + $0x200] sm:$0xff]  ;;  %v184_v17 = vld [vmem:[%s1354_s25 + $0x208] sm:$0xff] }
  0x19   : > { %177 = vst [vmem:[%s1362_s26 + $0x68] sm:$0xff] %v176_v13  ;;  %179 = vst [vmem:[%s1362_s26 + $0x70] sm:$0xff] %v178_v14  ;;  %v186_v18 = vld [vmem:[%s1354_s25 + $0x210] sm:$0xff]  ;;  %v188_v19 = vld [vmem:[%s1354_s25 + $0x218] sm:$0xff] }
  0x1a   : > { %181 = vst [vmem:[%s1362_s26 + $0x78] sm:$0xff] %v180_v15  ;;  %183 = vst [vmem:[%s1362_s26 + $0x80] sm:$0xff] %v182_v16  ;;  %v190_v20 = vld [vmem:[%s1354_s25 + $0x220] sm:$0xff]  ;;  %v192_v21 = vld [vmem:[%s1354_s25 + $0x228] sm:$0xff] }
  0x1b   : > { %185 = vst [vmem:[%s1362_s26 + $0x88] sm:$0xff] %v184_v17  ;;  %187 = vst [vmem:[%s1362_s26 + $0x90] sm:$0xff] %v186_v18  ;;  %v194_v22 = vld [vmem:[%s1354_s25 + $0x230] sm:$0xff]  ;;  %v196_v23 = vld [vmem:[%s1354_s25 + $0x238] sm:$0xff] }
  0x1c   : > { %189 = vst [vmem:[%s1362_s26 + $0x98] sm:$0xff] %v188_v19  ;;  %191 = vst [vmem:[%s1362_s26 + $0xa0] sm:$0xff] %v190_v20  ;;  %v198_v24 = vld [vmem:[%s1354_s25 + $0x240] sm:$0xff]  ;;  %v200_v25 = vld [vmem:[%s1354_s25 + $0x248] sm:$0xff] }
  0x1d   : > { %193 = vst [vmem:[%s1362_s26 + $0xa8] sm:$0xff] %v192_v21  ;;  %195 = vst [vmem:[%s1362_s26 + $0xb0] sm:$0xff] %v194_v22  ;;  %v202_v26 = vld [vmem:[%s1354_s25 + $0x250] sm:$0xff]  ;;  %v204_v27 = vld [vmem:[%s1354_s25 + $0x258] sm:$0xff] }
  0x1e   : > { %197 = vst [vmem:[%s1362_s26 + $0xb8] sm:$0xff] %v196_v23  ;;  %199 = vst [vmem:[%s1362_s26 + $0xc0] sm:$0xff] %v198_v24  ;;  %v206_v28 = vld [vmem:[%s1354_s25 + $0x260] sm:$0xff]  ;;  %v208_v29 = vld [vmem:[%s1354_s25 + $0x268] sm:$0xff] }
  0x1f   : > { %201 = vst [vmem:[%s1362_s26 + $0xc8] sm:$0xff] %v200_v25  ;;  %203 = vst [vmem:[%s1362_s26 + $0xd0] sm:$0xff] %v202_v26  ;;  %v210_v30 = vld [vmem:[%s1354_s25 + $0x270] sm:$0xff]  ;;  %v212_v31 = vld [vmem:[%s1354_s25 + $0x278] sm:$0xff] }
  0x20   : > { %205 = vst [vmem:[%s1362_s26 + $0xd8] sm:$0xff] %v204_v27  ;;  %207 = vst [vmem:[%s1362_s26 + $0xe0] sm:$0xff] %v206_v28  ;;  %v214_v32 = vld [vmem:[%s1354_s25 + $0x400] sm:$0xff]  ;;  %v216_v33 = vld [vmem:[%s1354_s25 + $0x408] sm:$0xff] }
  0x21   : > { %209 = vst [vmem:[%s1362_s26 + $0xe8] sm:$0xff] %v208_v29  ;;  %211 = vst [vmem:[%s1362_s26 + $0xf0] sm:$0xff] %v210_v30  ;;  %v218_v34 = vld [vmem:[%s1354_s25 + $0x410] sm:$0xff]  ;;  %v220_v35 = vld [vmem:[%s1354_s25 + $0x418] sm:$0xff] }
  0x22   : > { %213 = vst [vmem:[%s1362_s26 + $0xf8] sm:$0xff] %v212_v31  ;;  %215 = vst [vmem:[%s1362_s26 + $0x100] sm:$0xff] %v214_v32  ;;  %v222_v36 = vld [vmem:[%s1354_s25 + $0x420] sm:$0xff]  ;;  %v224_v37 = vld [vmem:[%s1354_s25 + $0x428] sm:$0xff] }
  0x23   : > { %217 = vst [vmem:[%s1362_s26 + $0x108] sm:$0xff] %v216_v33  ;;  %219 = vst [vmem:[%s1362_s26 + $0x110] sm:$0xff] %v218_v34  ;;  %v226_v38 = vld [vmem:[%s1354_s25 + $0x430] sm:$0xff]  ;;  %v228_v39 = vld [vmem:[%s1354_s25 + $0x438] sm:$0xff] }
  0x24   : > { %221 = vst [vmem:[%s1362_s26 + $0x118] sm:$0xff] %v220_v35  ;;  %223 = vst [vmem:[%s1362_s26 + $0x120] sm:$0xff] %v222_v36  ;;  %v230_v40 = vld [vmem:[%s1354_s25 + $0x440] sm:$0xff]  ;;  %v232_v41 = vld [vmem:[%s1354_s25 + $0x448] sm:$0xff] }
  0x25   : > { %225 = vst [vmem:[%s1362_s26 + $0x128] sm:$0xff] %v224_v37  ;;  %227 = vst [vmem:[%s1362_s26 + $0x130] sm:$0xff] %v226_v38  ;;  %v234_v42 = vld [vmem:[%s1354_s25 + $0x450] sm:$0xff]  ;;  %v236_v43 = vld [vmem:[%s1354_s25 + $0x458] sm:$0xff] }
  0x26   : > { %229 = vst [vmem:[%s1362_s26 + $0x138] sm:$0xff] %v228_v39  ;;  %231 = vst [vmem:[%s1362_s26 + $0x140] sm:$0xff] %v230_v40  ;;  %v238_v44 = vld [vmem:[%s1354_s25 + $0x460] sm:$0xff]  ;;  %v240_v45 = vld [vmem:[%s1354_s25 + $0x468] sm:$0xff] }
  0x27   : > { %233 = vst [vmem:[%s1362_s26 + $0x148] sm:$0xff] %v232_v41  ;;  %235 = vst [vmem:[%s1362_s26 + $0x150] sm:$0xff] %v234_v42  ;;  %v242_v46 = vld [vmem:[%s1354_s25 + $0x470] sm:$0xff]  ;;  %v244_v47 = vld [vmem:[%s1354_s25 + $0x478] sm:$0xff] }
  0x28   : > { %237 = vst [vmem:[%s1362_s26 + $0x158] sm:$0xff] %v236_v43  ;;  %239 = vst [vmem:[%s1362_s26 + $0x160] sm:$0xff] %v238_v44  ;;  %v246_v48 = vld [vmem:[%s1354_s25 + $0x600] sm:$0xff]  ;;  %v248_v49 = vld [vmem:[%s1354_s25 + $0x608] sm:$0xff] }
  0x29   : > { %241 = vst [vmem:[%s1362_s26 + $0x168] sm:$0xff] %v240_v45  ;;  %243 = vst [vmem:[%s1362_s26 + $0x170] sm:$0xff] %v242_v46  ;;  %v250_v50 = vld [vmem:[%s1354_s25 + $0x610] sm:$0xff]  ;;  %v252_v51 = vld [vmem:[%s1354_s25 + $0x618] sm:$0xff] }
  0x2a   : > { %245 = vst [vmem:[%s1362_s26 + $0x178] sm:$0xff] %v244_v47  ;;  %247 = vst [vmem:[%s1362_s26 + $0x180] sm:$0xff] %v246_v48  ;;  %v254_v52 = vld [vmem:[%s1354_s25 + $0x620] sm:$0xff]  ;;  %v256_v53 = vld [vmem:[%s1354_s25 + $0x628] sm:$0xff] }
  0x2b   : > { %249 = vst [vmem:[%s1362_s26 + $0x188] sm:$0xff] %v248_v49  ;;  %251 = vst [vmem:[%s1362_s26 + $0x190] sm:$0xff] %v250_v50  ;;  %v258_v54 = vld [vmem:[%s1354_s25 + $0x630] sm:$0xff]  ;;  %v260_v55 = vld [vmem:[%s1354_s25 + $0x638] sm:$0xff] }
  0x2c   : > { %253 = vst [vmem:[%s1362_s26 + $0x198] sm:$0xff] %v252_v51  ;;  %255 = vst [vmem:[%s1362_s26 + $0x1a0] sm:$0xff] %v254_v52  ;;  %v262_v56 = vld [vmem:[%s1354_s25 + $0x640] sm:$0xff]  ;;  %v264_v57 = vld [vmem:[%s1354_s25 + $0x648] sm:$0xff] }
  0x2d   : > { %257 = vst [vmem:[%s1362_s26 + $0x1a8] sm:$0xff] %v256_v53  ;;  %259 = vst [vmem:[%s1362_s26 + $0x1b0] sm:$0xff] %v258_v54  ;;  %v266_v58 = vld [vmem:[%s1354_s25 + $0x650] sm:$0xff]  ;;  %v268_v59 = vld [vmem:[%s1354_s25 + $0x658] sm:$0xff] }
  0x2e   : > { %261 = vst [vmem:[%s1362_s26 + $0x1b8] sm:$0xff] %v260_v55  ;;  %263 = vst [vmem:[%s1362_s26 + $0x1c0] sm:$0xff] %v262_v56  ;;  %v270_v60 = vld [vmem:[%s1354_s25 + $0x660] sm:$0xff]  ;;  %v272_v61 = vld [vmem:[%s1354_s25 + $0x668] sm:$0xff] }
  0x2f   : > { %265 = vst [vmem:[%s1362_s26 + $0x1c8] sm:$0xff] %v264_v57  ;;  %267 = vst [vmem:[%s1362_s26 + $0x1d0] sm:$0xff] %v266_v58  ;;  %v274_v62 = vld [vmem:[%s1354_s25 + $0x670] sm:$0xff]  ;;  %v276_v63 = vld [vmem:[%s1354_s25 + $0x678] sm:$0xff] }
  0x30   : > { %269 = vst [vmem:[%s1362_s26 + $0x1d8] sm:$0xff] %v268_v59  ;;  %271 = vst [vmem:[%s1362_s26 + $0x1e0] sm:$0xff] %v270_v60  ;;  %v278_v0 = vld [vmem:[%s1354_s25 + $0x800] sm:$0xff]  ;;  %v280_v1 = vld [vmem:[%s1354_s25 + $0x808] sm:$0xff] }
  0x31   : > { %273 = vst [vmem:[%s1362_s26 + $0x1e8] sm:$0xff] %v272_v61  ;;  %275 = vst [vmem:[%s1362_s26 + $0x1f0] sm:$0xff] %v274_v62  ;;  %v282_v2 = vld [vmem:[%s1354_s25 + $0x810] sm:$0xff]  ;;  %v284_v3 = vld [vmem:[%s1354_s25 + $0x818] sm:$0xff] }
  0x32   : > { %277 = vst [vmem:[%s1362_s26 + $0x1f8] sm:$0xff] %v276_v63  ;;  %279 = vst [vmem:[%s1362_s26 + $0x200] sm:$0xff] %v278_v0  ;;  %v286_v4 = vld [vmem:[%s1354_s25 + $0x820] sm:$0xff]  ;;  %v288_v5 = vld [vmem:[%s1354_s25 + $0x828] sm:$0xff] }
  0x33   : > { %281 = vst [vmem:[%s1362_s26 + $0x208] sm:$0xff] %v280_v1  ;;  %283 = vst [vmem:[%s1362_s26 + $0x210] sm:$0xff] %v282_v2  ;;  %v290_v6 = vld [vmem:[%s1354_s25 + $0x830] sm:$0xff]  ;;  %v292_v7 = vld [vmem:[%s1354_s25 + $0x838] sm:$0xff] }
  0x34   : > { %285 = vst [vmem:[%s1362_s26 + $0x218] sm:$0xff] %v284_v3  ;;  %287 = vst [vmem:[%s1362_s26 + $0x220] sm:$0xff] %v286_v4  ;;  %v294_v8 = vld [vmem:[%s1354_s25 + $0x840] sm:$0xff]  ;;  %v296_v9 = vld [vmem:[%s1354_s25 + $0x848] sm:$0xff] }
  0x35   : > { %289 = vst [vmem:[%s1362_s26 + $0x228] sm:$0xff] %v288_v5  ;;  %291 = vst [vmem:[%s1362_s26 + $0x230] sm:$0xff] %v290_v6  ;;  %v298_v10 = vld [vmem:[%s1354_s25 + $0x850] sm:$0xff]  ;;  %v300_v11 = vld [vmem:[%s1354_s25 + $0x858] sm:$0xff] }
  0x36   : > { %293 = vst [vmem:[%s1362_s26 + $0x238] sm:$0xff] %v292_v7  ;;  %295 = vst [vmem:[%s1362_s26 + $0x240] sm:$0xff] %v294_v8  ;;  %v302_v12 = vld [vmem:[%s1354_s25 + $0x860] sm:$0xff]  ;;  %v304_v13 = vld [vmem:[%s1354_s25 + $0x868] sm:$0xff] }
  0x37   : > { %297 = vst [vmem:[%s1362_s26 + $0x248] sm:$0xff] %v296_v9  ;;  %299 = vst [vmem:[%s1362_s26 + $0x250] sm:$0xff] %v298_v10  ;;  %v306_v14 = vld [vmem:[%s1354_s25 + $0x870] sm:$0xff]  ;;  %v308_v15 = vld [vmem:[%s1354_s25 + $0x878] sm:$0xff] }
  0x38   : > { %301 = vst [vmem:[%s1362_s26 + $0x258] sm:$0xff] %v300_v11  ;;  %303 = vst [vmem:[%s1362_s26 + $0x260] sm:$0xff] %v302_v12 }
  0x39   : > { %305 = vst [vmem:[%s1362_s26 + $0x268] sm:$0xff] %v304_v13  ;;  %307 = vst [vmem:[%s1362_s26 + $0x270] sm:$0xff] %v306_v14 }
  0x3a   : > { %309 = vst [vmem:[%s1362_s26 + $0x278] sm:$0xff] %v308_v15 }
  0x3b PF: > { %p1151_p5 = scmp.ge.s32.totalorder %s1296_s14, 1  ;;  %p314_p6 = scmp.lt.s32.totalorder %s1296_s14, 5 }
  0x3d   : > { %p315_p7 = pnand %p1151_p5, %p314_p6 }
  0x3e   : > { %s321_s27 = sand.u32 (!%p315_p7), 1, %s1288_s12   ;;  %v1298_v16 = vmov (!%p315_p7), 0.0   ;;  %v1065_v17 = vld [vmem:[%s1668_s2] sm:$0x3f] (!%p315_p7)  ;;  %v1299_v18 = vmov (!%p315_p7), 0   ;;  %vm436_vm0 = vcmask (!%p315_p7), 1043456  }
  0x3f   : > { %318 = sbr.rel (%p315_p7) target bundleno = 337 (0x151), region = 51  ;;  %549 = vmatprep.mubr.f32.mxu0 (!%p315_p7), %v1298_v16  ;;  %620 = vmatprep.mubr.f32.mxu1 (!%p315_p7), %v1298_v16  ;;  %v1554_v50 = vld [vmem:[%s1667_s1] sm:$0x3f] (!%p315_p7)  ;;  %vm432_vm1 = vcmask (!%p315_p7), 293888   ;;  %s1152_s7 = sshll.u32 (!%p315_p7), %s1145_s15, 2 }
  0x40   : > { %s1246_s28 = smul.u32 (!%p315_p7), 640, %s321_s27  ;;  %1273 = vset.pattern.permute.xlu0 (!%p315_p7), %v1299_v18  ;;  %p346_p8 = scmp.lt.s32.totalorder (!%p315_p7), %s1152_s7, 15 }
  0x41   : > { %1068 = vperm.xlu0 (!%p315_p7), %1273, %v1065_v17  }
  0x42   : > { %s1526_s4 = scalar_lea.vmem (!%p315_p7), [#allocation2], %s1246_s28 }
  0x43   : > { %v353_v19 = vld [vmem:[%s1526_s4 + $0x8] sm:$0xff] (!%p315_p7)  ;;  %v355_v21 = vld [vmem:[%s1526_s4 + $0x18] sm:$0xff] (!%p315_p7)  ;;  %v352_v24 = vld [vmem:[%s1526_s4] sm:$0xff] (!%p315_p7) }
  0x44   : > { %v369_v20 = vld [vmem:[%s1526_s4 + $0x88] sm:$0xff] (!%p315_p7)  ;;  %v371_v23 = vld [vmem:[%s1526_s4 + $0x98] sm:$0xff] (!%p315_p7)  ;;  %v368_v25 = vld [vmem:[%s1526_s4 + $0x80] sm:$0xff] (!%p315_p7) }
  0x45   : > { %v1181_v22 = vpack.c.bf16 (!%p315_p7), %v369_v20, %v353_v19  ;;  %v1189_v26 = vpack.c.bf16 (!%p315_p7), %v371_v23, %v355_v21  ;;  %v1183_v27 = vpack.c.bf16 (!%p315_p7), %v368_v25, %v352_v24  ;;  %v354_v28 = vld [vmem:[%s1526_s4 + $0x10] sm:$0xff] (!%p315_p7)  ;;  %v385_v30 = vld [vmem:[%s1526_s4 + $0x108] sm:$0xff] (!%p315_p7)  ;;  %v387_v33 = vld [vmem:[%s1526_s4 + $0x118] sm:$0xff] (!%p315_p7) }
  0x46   : > { %v370_v29 = vld [vmem:[%s1526_s4 + $0x90] sm:$0xff]  ;;  %v401_v32 = vld [vmem:[%s1526_s4 + $0x188] sm:$0xff]  ;;  %v403_v34 = vld [vmem:[%s1526_s4 + $0x198] sm:$0xff]  ;;  %s1674_s7 = smov (!%p346_p8, %s1152_s7), 15 }
  0x47   : > { %1182 = vmatprep.subr.bf16.mxu0 %v1181_v22  ;;  %v1191_v31 = vpack.c.bf16 %v370_v29, %v354_v28  ;;  %1190 = vmatprep.subr.bf16.mxu1 %v1189_v26  ;;  %v1185_v35 = vpack.c.bf16 %v401_v32, %v385_v30  ;;  %v1193_v36 = vpack.c.bf16 %v403_v34, %v387_v33  ;;  %v384_v37 = vld [vmem:[%s1526_s4 + $0x100] sm:$0xff]  ;;  %v386_v39 = vld [vmem:[%s1526_s4 + $0x110] sm:$0xff]  ;;  %v417_v43 = vld [vmem:[%s1526_s4 + $0x208] sm:$0xf]  ;;  %s1153_s8 = sshll.u32 %s1674_s7, 3 }
  0x48   : > { %1184 = vmatpush1.bf16.msra.mxu0 %v1183_v27  ;;  %v400_v38 = vld [vmem:[%s1526_s4 + $0x180] sm:$0xff]  ;;  %v402_v41 = vld [vmem:[%s1526_s4 + $0x190] sm:$0xff]  ;;  %v419_v44 = vld [vmem:[%s1526_s4 + $0x218] sm:$0xf]  ;;  %s349_s11 = scalar_lea.vmem %s1669_s3, %s1153_s8 }
  0x49   : > { %1192 = vmatpush1.bf16.msra.mxu1 %v1191_v31  ;;  %v1187_v40 = vpack.c.bf16 %v400_v38, %v384_v37  ;;  %1186 = vmatprep.subr.bf16.mxu0 %v1185_v35  ;;  %v1195_v42 = vpack.c.bf16 %v402_v41, %v386_v39  ;;  %v357_v45 = vld [vmem:[%s1526_s4 + $0x28] sm:$0xff]  ;;  %v416_v46 = vld [vmem:[%s1526_s4 + $0x200] sm:$0xf]  ;;  %v359_v48 = vld [vmem:[%s1526_s4 + $0x38] sm:$0xff] }
  0x4a   : > { %1194 = vmatprep.subr.bf16.mxu1 %v1193_v36  ;;  %v373_v47 = vld [vmem:[%s1526_s4 + $0xa8] sm:$0xff]  ;;  %v375_v49 = vld [vmem:[%s1526_s4 + $0xb8] sm:$0xff]  ;;  %v356_v51 = vld [vmem:[%s1526_s4 + $0x20] sm:$0xff] }
  0x4b   : > { %v372_v52 = vld [vmem:[%s1526_s4 + $0xa0] sm:$0xff]  ;;  %v358_v53 = vld [vmem:[%s1526_s4 + $0x30] sm:$0xff]  ;;  %v389_v55 = vld [vmem:[%s1526_s4 + $0x128] sm:$0xff]  ;;  %v1197_v58 = vpack.c.bf16 %v373_v47, %v357_v45  ;;  %v1205_v61 = vpack.c.bf16 %v375_v49, %v359_v48 }
  0x4c   : > { %1188 = vmatpush1.bf16.msra.mxu0 %v1187_v40  ;;  %v374_v54 = vld [vmem:[%s1526_s4 + $0xb0] sm:$0xff]  ;;  %v405_v56 = vld [vmem:[%s1526_s4 + $0x1a8] sm:$0xff]  ;;  %v391_v59 = vld [vmem:[%s1526_s4 + $0x138] sm:$0xff]  ;;  %v1199_v62 = vpack.c.bf16 %v372_v52, %v356_v51 }
  0x4d   : > { %1196 = vmatpush1.bf16.msra.mxu1 %v1195_v42  ;;  %1154 = vmatprep.subr.msk.mxu0 %vm436_vm0, %v417_v43  ;;  %v418_v57 = vld [vmem:[%s1526_s4 + $0x210] sm:$0xf]  ;;  %v407_v60 = vld [vmem:[%s1526_s4 + $0x1b8] sm:$0xff]  ;;  %v1207_v63 = vpack.c.bf16 %v374_v54, %v358_v53  ;;  %v1201_v0 = vpack.c.bf16 %v405_v56, %v389_v55  ;;  %v388_v1 = vld [vmem:[%s1526_s4 + $0x120] sm:$0xff] }
  0x4e   : > { %1157 = vmatprep.subr.msk.mxu1 %vm436_vm0, %v419_v44  ;;  %v404_v2 = vld [vmem:[%s1526_s4 + $0x1a0] sm:$0xff]  ;;  %v1209_v3 = vpack.c.bf16 %v407_v60, %v391_v59  ;;  %v390_v4 = vld [vmem:[%s1526_s4 + $0x130] sm:$0xff]  ;;  %v421_v8 = vld [vmem:[%s1526_s4 + $0x228] sm:$0xf] }
  0x4f   : > { %v406_v5 = vld [vmem:[%s1526_s4 + $0x1b0] sm:$0xff]  ;;  %v1203_v6 = vpack.c.bf16 %v404_v2, %v388_v1  ;;  %v423_v9 = vld [vmem:[%s1526_s4 + $0x238] sm:$0xf]  ;;  %v361_v10 = vld [vmem:[%s1526_s4 + $0x48] sm:$0xff] }
  0x50   : > { %1155 = vmatpush1.msk.msra.mxu0 %vm436_vm0, %v416_v46  ;;  %v1211_v7 = vpack.c.bf16 %v406_v5, %v390_v4  ;;  %v420_v11 = vld [vmem:[%s1526_s4 + $0x220] sm:$0xf]  ;;  %v377_v12 = vld [vmem:[%s1526_s4 + $0xc8] sm:$0xff]  ;;  %v363_v13 = vld [vmem:[%s1526_s4 + $0x58] sm:$0xff] }
  0x51   : > { %1158 = vmatpush1.msk.msra.mxu1 %vm436_vm0, %v418_v57  ;;  %1156 = vmatmul.mubr.msk.f32.vlgmr.msra.gmra.mrb[0].mxu0 %vm432_vm1, %v1554_v50  ;;  %v379_v14 = vld [vmem:[%s1526_s4 + $0xd8] sm:$0xff]  ;;  %v360_v15 = vld [vmem:[%s1526_s4 + $0x40] sm:$0xff]  ;;  %v362_v18 = vld [vmem:[%s1526_s4 + $0x50] sm:$0xff]  ;;  %v1213_v23 = vpack.c.bf16 %v377_v12, %v361_v10 }
  0x52   : > { %1159 = vmatmul.mubr.msk.f32.vlgmr.msra.gmra.mrb[0].mxu1 %vm432_vm1, %v1554_v50  ;;  %1198 = vmatprep.subr.bf16.mxu0 %v1197_v58  ;;  %v376_v17 = vld [vmem:[%s1526_s4 + $0xc0] sm:$0xff]  ;;  %v378_v19 = vld [vmem:[%s1526_s4 + $0xd0] sm:$0xff]  ;;  %v393_v20 = vld [vmem:[%s1526_s4 + $0x148] sm:$0xff]  ;;  %v1221_v26 = vpack.c.bf16 %v379_v14, %v363_v13 }
  0x53   : > { %1206 = vmatprep.subr.bf16.mxu1 %v1205_v61  ;;  %1200 = vmatpush1.bf16.msra.mxu0 %v1199_v62  ;;  %v409_v21 = vld [vmem:[%s1526_s4 + $0x1c8] sm:$0xff]  ;;  %v422_v22 = vld [vmem:[%s1526_s4 + $0x230] sm:$0xf]  ;;  %v395_v24 = vld [vmem:[%s1526_s4 + $0x158] sm:$0xff]  ;;  %v1215_v27 = vpack.c.bf16 %v376_v17, %v360_v15  ;;  %v1223_v28 = vpack.c.bf16 %v378_v19, %v362_v18 }
  0x54   : > { %1208 = vmatpush1.bf16.msra.mxu1 %v1207_v63  ;;  %1202 = vmatprep.subr.bf16.mxu0 %v1201_v0  ;;  %v411_v25 = vld [vmem:[%s1526_s4 + $0x1d8] sm:$0xff]  ;;  %v1217_v29 = vpack.c.bf16 %v409_v21, %v393_v20  ;;  %v392_v30 = vld [vmem:[%s1526_s4 + $0x140] sm:$0xff]  ;;  %v394_v33 = vld [vmem:[%s1526_s4 + $0x150] sm:$0xff] }
  0x55   : > { %1210 = vmatprep.subr.bf16.mxu1 %v1209_v3  ;;  %691 = vmatprep.mubr.f32.mxu0 %v1298_v16  ;;  %v408_v31 = vld [vmem:[%s1526_s4 + $0x1c0] sm:$0xff]  ;;  %v1225_v32 = vpack.c.bf16 %v411_v25, %v395_v24  ;;  %v410_v34 = vld [vmem:[%s1526_s4 + $0x1d0] sm:$0xff]  ;;  %v425_v37 = vld [vmem:[%s1526_s4 + $0x248] sm:$0xf] }
  0x56   : > { %762 = vmatprep.mubr.f32.mxu1 %v1298_v16  ;;  %v1219_v35 = vpack.c.bf16 %v408_v31, %v392_v30  ;;  %v1227_v36 = vpack.c.bf16 %v410_v34, %v394_v33  ;;  %v427_v38 = vld [vmem:[%s1526_s4 + $0x258] sm:$0xf]  ;;  %v365_v39 = vld [vmem:[%s1526_s4 + $0x68] sm:$0xff]  ;;  %v424_v40 = vld [vmem:[%s1526_s4 + $0x240] sm:$0xf] }
  0x57   : > { %1204 = vmatpush1.bf16.msra.mxu0 %v1203_v6  ;;  %v381_v41 = vld [vmem:[%s1526_s4 + $0xe8] sm:$0xff]  ;;  %v367_v42 = vld [vmem:[%s1526_s4 + $0x78] sm:$0xff]  ;;  %v364_v44 = vld [vmem:[%s1526_s4 + $0x60] sm:$0xff] }
  0x58   : > { %1212 = vmatpush1.bf16.msra.mxu1 %v1211_v7  ;;  %1160 = vmatprep.subr.msk.mxu0 %vm436_vm0, %v421_v8  ;;  %v383_v43 = vld [vmem:[%s1526_s4 + $0xf8] sm:$0xff]  ;;  %v380_v45 = vld [vmem:[%s1526_s4 + $0xe0] sm:$0xff]  ;;  %v366_v46 = vld [vmem:[%s1526_s4 + $0x70] sm:$0xff]  ;;  %v1229_v52 = vpack.c.bf16 %v381_v41, %v365_v39 }
  0x59   : > { %1163 = vmatprep.subr.msk.mxu1 %vm436_vm0, %v423_v9  ;;  %v382_v47 = vld [vmem:[%s1526_s4 + $0xf0] sm:$0xff]  ;;  %v397_v48 = vld [vmem:[%s1526_s4 + $0x168] sm:$0xff]  ;;  %v399_v53 = vld [vmem:[%s1526_s4 + $0x178] sm:$0xff]  ;;  %v1237_v55 = vpack.c.bf16 %v383_v43, %v367_v42  ;;  %v1231_v56 = vpack.c.bf16 %v380_v45, %v364_v44 }
  0x5a   : > { %v413_v49 = vld [vmem:[%s1526_s4 + $0x1e8] sm:$0xff]  ;;  %v426_v51 = vld [vmem:[%s1526_s4 + $0x250] sm:$0xf]  ;;  %v415_v54 = vld [vmem:[%s1526_s4 + $0x1f8] sm:$0xff]  ;;  %v1239_v57 = vpack.c.bf16 %v382_v47, %v366_v46 }
  0x5b   : > { %1161 = vmatpush1.msk.msra.mxu0 %vm436_vm0, %v420_v11  ;;  %v1233_v58 = vpack.c.bf16 %v413_v49, %v397_v48  ;;  %v396_v59 = vld [vmem:[%s1526_s4 + $0x160] sm:$0xff]  ;;  %v1241_v61 = vpack.c.bf16 %v415_v54, %v399_v53  ;;  %v398_v62 = vld [vmem:[%s1526_s4 + $0x170] sm:$0xff]  ;;  %v429_v2 = vld [vmem:[%s1526_s4 + $0x268] sm:$0xf] }
  0x5c   : > { %1164 = vmatpush1.msk.msra.mxu1 %vm436_vm0, %v422_v22  ;;  %1162 = vmatmul.mubr.msk.f32.vlgmr.msra.gmra.mrb[2].mxu0 %vm432_vm1, %v1554_v50  ;;  %v412_v60 = vld [vmem:[%s1526_s4 + $0x1e0] sm:$0xff]  ;;  %v414_v63 = vld [vmem:[%s1526_s4 + $0x1f0] sm:$0xff]  ;;  %v431_v3 = vld [vmem:[%s1526_s4 + $0x278] sm:$0xf] }
  0x5d   : > { %1165 = vmatmul.mubr.msk.f32.vlgmr.msra.gmra.mrb[2].mxu1 %vm432_vm1, %v1554_v50  ;;  %1214 = vmatprep.subr.bf16.mxu0 %v1213_v23  ;;  %v1235_v0 = vpack.c.bf16 %v412_v60, %v396_v59  ;;  %v1243_v1 = vpack.c.bf16 %v414_v63, %v398_v62  ;;  %v428_v4 = vld [vmem:[%s1526_s4 + $0x260] sm:$0xf]  ;;  %v430_v5 = vld [vmem:[%s1526_s4 + $0x270] sm:$0xf] }
  0x5e   : > { %1222 = vmatprep.subr.bf16.mxu1 %v1221_v26  ;;  %1216 = vmatpush1.bf16.msra.mxu0 %v1215_v27 }
  0x5f   : > { %1224 = vmatpush1.bf16.msra.mxu1 %v1223_v28  ;;  %1218 = vmatprep.subr.bf16.mxu0 %v1217_v29 }
  0x60   : > { %1226 = vmatprep.subr.bf16.mxu1 %v1225_v32  ;;  %833 = vmatprep.mubr.f32.mxu0 %v1298_v16 }
  0x61   : > { %904 = vmatprep.mubr.f32.mxu1 %v1298_v16 }
  0x62   : > { %1220 = vmatpush1.bf16.msra.mxu0 %v1219_v35 }
  0x63   : > { %1228 = vmatpush1.bf16.msra.mxu1 %v1227_v36  ;;  %1166 = vmatprep.subr.msk.mxu0 %vm436_vm0, %v425_v37 }
  0x64   : > { %1169 = vmatprep.subr.msk.mxu1 %vm436_vm0, %v427_v38 }
  0x66   : > { %1167 = vmatpush1.msk.msra.mxu0 %vm436_vm0, %v424_v40 }
  0x67   : > { %1170 = vmatpush1.msk.msra.mxu1 %vm436_vm0, %v426_v51  ;;  %1168 = vmatmul.mubr.msk.f32.vlgmr.msra.gmra.mrb[4].mxu0 %vm432_vm1, %v1554_v50 }
  0x68   : > { %1171 = vmatmul.mubr.msk.f32.vlgmr.msra.gmra.mrb[4].mxu1 %vm432_vm1, %v1554_v50  ;;  %1230 = vmatprep.subr.bf16.mxu0 %v1229_v52 }
  0x69   : > { %1238 = vmatprep.subr.bf16.mxu1 %v1237_v55  ;;  %1232 = vmatpush1.bf16.msra.mxu0 %v1231_v56 }
  0x6a   : > { %1240 = vmatpush1.bf16.msra.mxu1 %v1239_v57  ;;  %1234 = vmatprep.subr.bf16.mxu0 %v1233_v58 }
  0x6b   : > { %1242 = vmatprep.subr.bf16.mxu1 %v1241_v61  ;;  %975 = vmatprep.mubr.f32.mxu0 %v1298_v16 }
  0x6c   : > { %1046 = vmatprep.mubr.f32.mxu1 %v1298_v16 }
  0x6d   : > { %1236 = vmatpush1.bf16.msra.mxu0 %v1235_v0 }
  0x6e   : > { %1244 = vmatpush1.bf16.msra.mxu1 %v1243_v1  ;;  %1172 = vmatprep.subr.msk.mxu0 %vm436_vm0, %v429_v2 }
  0x6f   : > { %1175 = vmatprep.subr.msk.mxu1 %vm436_vm0, %v431_v3 }
  0x71   : > { %1173 = vmatpush1.msk.msra.mxu0 %vm436_vm0, %v428_v4 }
  0x72   : > { %1176 = vmatpush1.msk.msra.mxu1 %vm436_vm0, %v430_v5  ;;  %1174 = vmatmul.mubr.msk.f32.vlgmr.msra.gmra.mrb[6].mxu0 %vm432_vm1, %v1554_v50 }
  0x73   : > { %1177 = vmatmul.mubr.msk.f32.vlgmr.msra.gmra.mrb[6].mxu1 %vm432_vm1, %v1554_v50 }
  0xc0   : > { %v1069_v28 = vpop.permute.xlu0 %1068 }
 0x124   : > { %v551_v6 = vpop.f32.mrb[0].mxu0 }
 0x125   : > { %v622_v16 = vpop.f32.mrb[0].mxu1  ;;  %v553_v7 = vpop.f32.mrb[1].mxu0 }
 0x126   : > { %v624_v8 = vpop.f32.mrb[1].mxu1 }
 0x12f   : > { %v693_v9 = vpop.f32.mrb[2].mxu0 }
 0x130   : > { %v1053_v10 = vmax.f32 %v551_v6, %v693_v9  ;;  %v764_v11 = vpop.f32.mrb[2].mxu1  ;;  %v695_v12 = vpop.f32.mrb[3].mxu0 }
 0x131   : > { %v1055_v13 = vmax.f32 %v622_v16, %v764_v11  ;;  %v1054_v14 = vmax.f32 %v553_v7, %v695_v12  ;;  %v766_v15 = vpop.f32.mrb[3].mxu1 }
 0x132   : > { %v1056_v17 = vmax.f32 %v624_v8, %v766_v15 }
 0x13a   : > { %v835_v18 = vpop.f32.mrb[4].mxu0 }
 0x13b   : > { %v906_v19 = vpop.f32.mrb[4].mxu1  ;;  %v837_v20 = vpop.f32.mrb[5].mxu0 }
 0x13c   : > { %v908_v21 = vpop.f32.mrb[5].mxu1 }
 0x145   : > { %v977_v50 = vpop.f32.mrb[6].mxu0 }
 0x146   : > { %v1057_v22 = vmax.f32 %v835_v18, %v977_v50  ;;  %v1048_v23 = vpop.f32.mrb[6].mxu1  ;;  %v979_v24 = vpop.f32.mrb[7].mxu0 }
 0x147   : > { %v1059_v25 = vmax.f32 %v906_v19, %v1048_v23  ;;  %v1058_v26 = vmax.f32 %v837_v20, %v979_v24  ;;  %v1050_v27 = vpop.f32.mrb[7].mxu1 }
 0x148   : > { %v1061_v29 = vmax.f32 %v1053_v10, %v1057_v22  ;;  %v1060_v30 = vmax.f32 %v908_v21, %v1050_v27 }
 0x149   : > { %v1063_v31 = vmax.f32 %v1055_v13, %v1059_v25  ;;  %v1062_v32 = vmax.f32 %v1054_v14, %v1058_v26 }
 0x14a   : > { %v1064_v33 = vmax.f32 %v1056_v17, %v1060_v30  ;;  %v1071_v34 = vadd.f32 %v1069_v28, %v1061_v29 }
 0x14b   : > { %v1072_v35 = vadd.f32 %v1069_v28, %v1062_v32  ;;  %v1073_v36 = vadd.f32 %v1069_v28, %v1063_v31 }
 0x14c   : > { %v1074_v37 = vadd.f32 %v1069_v28, %v1064_v33  ;;  %v1075_v38 = vmax.f32 %v1071_v34, 0.0 }
 0x14d   : > { %v1076_v39 = vmax.f32 %v1072_v35, 0.0  ;;  %v1077_v40 = vmax.f32 %v1073_v36, 0.0 }
 0x14e   : > { %v1078_v41 = vmax.f32 %v1074_v37, 0.0  ;;  %1079 = vst [vmem:[%s349_s11] sm:$0x3f] %v1075_v38 }
 0x14f   : > { %1080 = vst [vmem:[%s349_s11 + $0x8] sm:$0x3f] %v1076_v39  ;;  %1081 = vst [vmem:[%s349_s11 + $0x10] sm:$0x3f] %v1077_v40 }
 0x150   : > { %1082 = vst [vmem:[%s349_s11 + $0x18] sm:$0x3f] %v1078_v41 }
 0x151 PF: > { %p10_p9 = scmp.ge.s32.totalorder %s1337_s16, 6   ;;  %s1670_s12 = smov %s1292_s13 }
 0x152   : > { %s1671_s13 = smov %s1346_s19  ;;  %s1672_s14 = smov %s1337_s16 }
 0x153   :  { %12 = sbr.rel (!%p10_p9) target bundleno = 2 (0x2), region = 90 }

// kernel: cnn_forward.5
= control target key start
LH: loop header
LB: loop body
LE: loop exit
PB: predicated region body
PF: predicated region fallthrough
CT: control target
= control target key end

     0   :  { %v995_v3 = vmov 0.0   ;;  %v996_v8 = vmov 0   ;;  %vm135_vm0 = vcmask 1045504   ;;  %vm128_vm1 = vcmask 441344   ;;  %s1457_s0 = inlined_call_operand.vmem [shape: f32[54,2048], index: 0, kind: input, shape index: {}]   ;;  %s1458_s1 = inlined_call_operand.vmem [shape: f32[12,54], index: 1, kind: input, shape index: {}]   ;;  %s1459_s2 = inlined_call_operand.vmem [shape: f32[12,1], index: 2, kind: input, shape index: {}]   ;;  %s1460_s3 = inlined_call_operand.vmem [shape: f32[12,512], index: 3, kind: output, shape index: {}]  }
   0x1   :  { %v17_v0 = vld [vmem:[%s1457_s0 + $0x8] sm:$0xff]  ;;  %v19_v2 = vld [vmem:[%s1457_s0 + $0x18] sm:$0xff]  ;;  %248 = vmatprep.mubr.f32.mxu0 %v995_v3  ;;  %325 = vmatprep.mubr.f32.mxu1 %v995_v3  ;;  %v16_v6 = vld [vmem:[%s1457_s0] sm:$0xff] }
   0x2   :  { %v33_v1 = vld [vmem:[%s1457_s0 + $0x88] sm:$0xff]  ;;  %v35_v5 = vld [vmem:[%s1457_s0 + $0x98] sm:$0xff]  ;;  %v32_v7 = vld [vmem:[%s1457_s0 + $0x80] sm:$0xff]  ;;  %994 = vset.pattern.permute.xlu0 %v996_v8 }
   0x3   :  { %v896_v4 = vpack.c.bf16 %v33_v1, %v17_v0  ;;  %v908_v9 = vpack.c.bf16 %v35_v5, %v19_v2  ;;  %v898_v10 = vpack.c.bf16 %v32_v7, %v16_v6  ;;  %v18_v11 = vld [vmem:[%s1457_s0 + $0x10] sm:$0xff]  ;;  %v49_v13 = vld [vmem:[%s1457_s0 + $0x108] sm:$0xff]  ;;  %v51_v16 = vld [vmem:[%s1457_s0 + $0x118] sm:$0xff] }
   0x4   :  { %v34_v12 = vld [vmem:[%s1457_s0 + $0x90] sm:$0xff]  ;;  %v65_v15 = vld [vmem:[%s1457_s0 + $0x188] sm:$0xff]  ;;  %v67_v17 = vld [vmem:[%s1457_s0 + $0x198] sm:$0xff] }
   0x5   :  { %897 = vmatprep.subr.bf16.mxu0 %v896_v4  ;;  %v910_v14 = vpack.c.bf16 %v34_v12, %v18_v11  ;;  %909 = vmatprep.subr.bf16.mxu1 %v908_v9  ;;  %v900_v18 = vpack.c.bf16 %v65_v15, %v49_v13  ;;  %v912_v19 = vpack.c.bf16 %v67_v17, %v51_v16  ;;  %v48_v20 = vld [vmem:[%s1457_s0 + $0x100] sm:$0xff]  ;;  %v50_v22 = vld [vmem:[%s1457_s0 + $0x110] sm:$0xff]  ;;  %v81_v25 = vld [vmem:[%s1457_s0 + $0x208] sm:$0xff] }
   0x6   :  { %899 = vmatpush1.bf16.msra.mxu0 %v898_v10  ;;  %v64_v21 = vld [vmem:[%s1457_s0 + $0x180] sm:$0xff]  ;;  %v66_v24 = vld [vmem:[%s1457_s0 + $0x190] sm:$0xff]  ;;  %v97_v26 = vld [vmem:[%s1457_s0 + $0x288] sm:$0xff] }
   0x7   :  { %911 = vmatpush1.bf16.msra.mxu1 %v910_v14  ;;  %v902_v23 = vpack.c.bf16 %v64_v21, %v48_v20  ;;  %901 = vmatprep.subr.bf16.mxu0 %v900_v18  ;;  %v914_v27 = vpack.c.bf16 %v66_v24, %v50_v22  ;;  %v904_v28 = vpack.c.bf16 %v97_v26, %v81_v25  ;;  %v83_v29 = vld [vmem:[%s1457_s0 + $0x218] sm:$0xff]  ;;  %v80_v31 = vld [vmem:[%s1457_s0 + $0x200] sm:$0xff]  ;;  %v82_v34 = vld [vmem:[%s1457_s0 + $0x210] sm:$0xff] }
   0x8   :  { %913 = vmatprep.subr.bf16.mxu1 %v912_v19  ;;  %v99_v30 = vld [vmem:[%s1457_s0 + $0x298] sm:$0xff]  ;;  %v96_v33 = vld [vmem:[%s1457_s0 + $0x280] sm:$0xff]  ;;  %v98_v35 = vld [vmem:[%s1457_s0 + $0x290] sm:$0xff] }
   0x9   :  { %v916_v32 = vpack.c.bf16 %v99_v30, %v83_v29  ;;  %v906_v36 = vpack.c.bf16 %v96_v33, %v80_v31  ;;  %v918_v37 = vpack.c.bf16 %v98_v35, %v82_v34  ;;  %v113_v38 = vld [vmem:[%s1457_s0 + $0x308] sm:$0x3f]  ;;  %v115_v39 = vld [vmem:[%s1457_s0 + $0x318] sm:$0x3f]  ;;  %v112_v41 = vld [vmem:[%s1457_s0 + $0x300] sm:$0x3f] }
   0xa   :  { %903 = vmatpush1.bf16.msra.mxu0 %v902_v23  ;;  %v21_v40 = vld [vmem:[%s1457_s0 + $0x28] sm:$0xff]  ;;  %v23_v43 = vld [vmem:[%s1457_s0 + $0x38] sm:$0xff]  ;;  %v114_v45 = vld [vmem:[%s1457_s0 + $0x310] sm:$0x3f] }
   0xb   :  { %915 = vmatpush1.bf16.msra.mxu1 %v914_v27  ;;  %905 = vmatprep.subr.bf16.mxu0 %v904_v28  ;;  %v37_v42 = vld [vmem:[%s1457_s0 + $0xa8] sm:$0xff]  ;;  %v39_v44 = vld [vmem:[%s1457_s0 + $0xb8] sm:$0xff]  ;;  %v20_v46 = vld [vmem:[%s1457_s0 + $0x20] sm:$0xff] }
   0xc   :  { %917 = vmatprep.subr.bf16.mxu1 %v916_v32  ;;  %v36_v47 = vld [vmem:[%s1457_s0 + $0xa0] sm:$0xff]  ;;  %v22_v48 = vld [vmem:[%s1457_s0 + $0x30] sm:$0xff]  ;;  %v53_v50 = vld [vmem:[%s1457_s0 + $0x128] sm:$0xff]  ;;  %v920_v53 = vpack.c.bf16 %v37_v42, %v21_v40  ;;  %v932_v56 = vpack.c.bf16 %v39_v44, %v23_v43 }
   0xd   :  { %v38_v49 = vld [vmem:[%s1457_s0 + $0xb0] sm:$0xff]  ;;  %v69_v51 = vld [vmem:[%s1457_s0 + $0x1a8] sm:$0xff]  ;;  %v1138_v52 = vld [vmem:[%s1458_s1] sm:$0xff]  ;;  %v922_v57 = vpack.c.bf16 %v36_v47, %v20_v46 }
   0xe   :  { %907 = vmatpush1.bf16.msra.mxu0 %v906_v36  ;;  %v55_v54 = vld [vmem:[%s1457_s0 + $0x138] sm:$0xff]  ;;  %v934_v58 = vpack.c.bf16 %v38_v49, %v22_v48  ;;  %v924_v59 = vpack.c.bf16 %v69_v51, %v53_v50  ;;  %v52_v60 = vld [vmem:[%s1457_s0 + $0x120] sm:$0xff]  ;;  %v54_v62 = vld [vmem:[%s1457_s0 + $0x130] sm:$0xff] }
   0xf   :  { %919 = vmatpush1.bf16.msra.mxu1 %v918_v37  ;;  %864 = vmatprep.subr.msk.mxu0 %vm135_vm0, %v113_v38  ;;  %v71_v55 = vld [vmem:[%s1457_s0 + $0x1b8] sm:$0xff]  ;;  %v68_v61 = vld [vmem:[%s1457_s0 + $0x1a0] sm:$0xff]  ;;  %v70_v0 = vld [vmem:[%s1457_s0 + $0x1b0] sm:$0xff] }
  0x10   :  { %868 = vmatprep.subr.msk.mxu1 %vm135_vm0, %v115_v39  ;;  %v936_v63 = vpack.c.bf16 %v71_v55, %v55_v54  ;;  %v85_v1 = vld [vmem:[%s1457_s0 + $0x228] sm:$0xff]  ;;  %v87_v4 = vld [vmem:[%s1457_s0 + $0x238] sm:$0xff]  ;;  %v926_v6 = vpack.c.bf16 %v68_v61, %v52_v60  ;;  %v938_v8 = vpack.c.bf16 %v70_v0, %v54_v62  ;;  %v84_v10 = vld [vmem:[%s1457_s0 + $0x220] sm:$0xff] }
  0x11   :  { %v101_v2 = vld [vmem:[%s1457_s0 + $0x2a8] sm:$0xff]  ;;  %v103_v5 = vld [vmem:[%s1457_s0 + $0x2b8] sm:$0xff]  ;;  %v100_v11 = vld [vmem:[%s1457_s0 + $0x2a0] sm:$0xff] }
  0x12   :  { %865 = vmatpush1.msk.msra.mxu0 %vm135_vm0, %v112_v41  ;;  %v1179_v7 = vld [vmem:[%s1458_s1 + $0x8] sm:$0xf]  ;;  %v928_v9 = vpack.c.bf16 %v101_v2, %v85_v1  ;;  %v940_v12 = vpack.c.bf16 %v103_v5, %v87_v4  ;;  %v86_v13 = vld [vmem:[%s1457_s0 + $0x230] sm:$0xff]  ;;  %v930_v15 = vpack.c.bf16 %v100_v11, %v84_v10  ;;  %v119_v18 = vld [vmem:[%s1457_s0 + $0x338] sm:$0x3f] }
  0x13   :  { %869 = vmatpush1.msk.msra.mxu1 %vm135_vm0, %v114_v45  ;;  %866 = vmatmul.mubr.msk.f32.vlgmr.msra.gmra.mrb[0].mxu0 %vm128_vm1, %v1138_v52  ;;  %v102_v14 = vld [vmem:[%s1457_s0 + $0x2b0] sm:$0xff]  ;;  %v117_v17 = vld [vmem:[%s1457_s0 + $0x328] sm:$0x3f]  ;;  %v27_v21 = vld [vmem:[%s1457_s0 + $0x58] sm:$0xff] }
  0x14   :  { %870 = vmatmul.mubr.msk.f32.vlgmr.msra.gmra.mrb[0].mxu1 %vm128_vm1, %v1138_v52  ;;  %921 = vmatprep.subr.bf16.mxu0 %v920_v53  ;;  %v942_v16 = vpack.c.bf16 %v102_v14, %v86_v13  ;;  %v25_v19 = vld [vmem:[%s1457_s0 + $0x48] sm:$0xff]  ;;  %v43_v22 = vld [vmem:[%s1457_s0 + $0xd8] sm:$0xff]  ;;  %v24_v23 = vld [vmem:[%s1457_s0 + $0x40] sm:$0xff] }
  0x15   :  { %933 = vmatprep.subr.bf16.mxu1 %v932_v56  ;;  %923 = vmatpush1.bf16.msra.mxu0 %v922_v57  ;;  %v41_v20 = vld [vmem:[%s1457_s0 + $0xc8] sm:$0xff]  ;;  %v40_v24 = vld [vmem:[%s1457_s0 + $0xc0] sm:$0xff]  ;;  %v26_v26 = vld [vmem:[%s1457_s0 + $0x50] sm:$0xff]  ;;  %v956_v31 = vpack.c.bf16 %v43_v22, %v27_v21 }
  0x16   :  { %935 = vmatpush1.bf16.msra.mxu1 %v934_v58  ;;  %925 = vmatprep.subr.bf16.mxu0 %v924_v59  ;;  %v116_v25 = vld [vmem:[%s1457_s0 + $0x320] sm:$0x3f]  ;;  %v42_v27 = vld [vmem:[%s1457_s0 + $0xd0] sm:$0xff]  ;;  %v944_v29 = vpack.c.bf16 %v41_v20, %v25_v19  ;;  %v57_v30 = vld [vmem:[%s1457_s0 + $0x148] sm:$0xff]  ;;  %v946_v32 = vpack.c.bf16 %v40_v24, %v24_v23 }
  0x17   :  { %937 = vmatprep.subr.bf16.mxu1 %v936_v63  ;;  %254 = vmatprep.mubr.f32.mxu0 %v995_v3  ;;  %v118_v28 = vld [vmem:[%s1457_s0 + $0x330] sm:$0x3f]  ;;  %v73_v33 = vld [vmem:[%s1457_s0 + $0x1c8] sm:$0xff]  ;;  %v59_v34 = vld [vmem:[%s1457_s0 + $0x158] sm:$0xff]  ;;  %v958_v36 = vpack.c.bf16 %v42_v27, %v26_v26 }
  0x18   :  { %331 = vmatprep.mubr.f32.mxu1 %v995_v3  ;;  %867 = vmatmul.mubr.msk.f32.gmra.mrb[2].mxu0 %vm128_vm1, %v1179_v7  ;;  %v75_v35 = vld [vmem:[%s1457_s0 + $0x1d8] sm:$0xff]  ;;  %v56_v37 = vld [vmem:[%s1457_s0 + $0x140] sm:$0xff]  ;;  %v58_v39 = vld [vmem:[%s1457_s0 + $0x150] sm:$0xff]  ;;  %v948_v43 = vpack.c.bf16 %v73_v33, %v57_v30 }
  0x19   :  { %927 = vmatpush1.bf16.msra.mxu0 %v926_v6  ;;  %871 = vmatmul.mubr.msk.f32.gmra.mrb[2].mxu1 %vm128_vm1, %v1179_v7  ;;  %v72_v38 = vld [vmem:[%s1457_s0 + $0x1c0] sm:$0xff]  ;;  %v74_v40 = vld [vmem:[%s1457_s0 + $0x1d0] sm:$0xff]  ;;  %v89_v41 = vld [vmem:[%s1457_s0 + $0x248] sm:$0xff]  ;;  %v960_v46 = vpack.c.bf16 %v75_v35, %v59_v34 }
  0x1a   :  { %939 = vmatpush1.bf16.msra.mxu1 %v938_v8  ;;  %929 = vmatprep.subr.bf16.mxu0 %v928_v9  ;;  %v105_v42 = vld [vmem:[%s1457_s0 + $0x2c8] sm:$0xff]  ;;  %v91_v44 = vld [vmem:[%s1457_s0 + $0x258] sm:$0xff]  ;;  %v950_v47 = vpack.c.bf16 %v72_v38, %v56_v37  ;;  %v962_v48 = vpack.c.bf16 %v74_v40, %v58_v39  ;;  %v88_v50 = vld [vmem:[%s1457_s0 + $0x240] sm:$0xff] }
  0x1b   :  { %941 = vmatprep.subr.bf16.mxu1 %v940_v12  ;;  %402 = vmatprep.mubr.f32.mxu0 %v995_v3  ;;  %v107_v45 = vld [vmem:[%s1457_s0 + $0x2d8] sm:$0xff]  ;;  %v952_v49 = vpack.c.bf16 %v105_v42, %v89_v41  ;;  %v104_v51 = vld [vmem:[%s1457_s0 + $0x2c0] sm:$0xff]  ;;  %v90_v54 = vld [vmem:[%s1457_s0 + $0x250] sm:$0xff] }
  0x1c   :  { %479 = vmatprep.mubr.f32.mxu1 %v995_v3  ;;  %v964_v53 = vpack.c.bf16 %v107_v45, %v91_v44  ;;  %v106_v55 = vld [vmem:[%s1457_s0 + $0x2d0] sm:$0xff]  ;;  %v954_v56 = vpack.c.bf16 %v104_v51, %v88_v50  ;;  %v824_v57 = vld [vmem:[%s1459_s2] sm:$0xff]  ;;  %v121_v59 = vld [vmem:[%s1457_s0 + $0x348] sm:$0x3f] }
  0x1d   :  { %931 = vmatpush1.bf16.msra.mxu0 %v930_v15  ;;  %v966_v58 = vpack.c.bf16 %v106_v55, %v90_v54  ;;  %v123_v60 = vld [vmem:[%s1457_s0 + $0x358] sm:$0x3f]  ;;  %v29_v61 = vld [vmem:[%s1457_s0 + $0x68] sm:$0xff]  ;;  %v120_v63 = vld [vmem:[%s1457_s0 + $0x340] sm:$0x3f]  ;;  %828 = vperm.xlu0 %994, %v824_v57  }
  0x1e   :  { %943 = vmatpush1.bf16.msra.mxu1 %v942_v16  ;;  %872 = vmatprep.subr.msk.mxu0 %vm135_vm0, %v117_v17  ;;  %v45_v62 = vld [vmem:[%s1457_s0 + $0xe8] sm:$0xff]  ;;  %v31_v0 = vld [vmem:[%s1457_s0 + $0x78] sm:$0xff]  ;;  %v28_v2 = vld [vmem:[%s1457_s0 + $0x60] sm:$0xff] }
  0x1f   :  { %876 = vmatprep.subr.msk.mxu1 %vm135_vm0, %v119_v18  ;;  %v47_v1 = vld [vmem:[%s1457_s0 + $0xf8] sm:$0xff]  ;;  %v44_v4 = vld [vmem:[%s1457_s0 + $0xe0] sm:$0xff]  ;;  %v30_v5 = vld [vmem:[%s1457_s0 + $0x70] sm:$0xff]  ;;  %v968_v12 = vpack.c.bf16 %v45_v62, %v29_v61 }
  0x20   :  { %v825_v6 = vld [vmem:[%s1459_s2 + $0x8] sm:$0xf]  ;;  %v46_v8 = vld [vmem:[%s1457_s0 + $0xf0] sm:$0xff]  ;;  %v63_v13 = vld [vmem:[%s1457_s0 + $0x178] sm:$0xff]  ;;  %v980_v15 = vpack.c.bf16 %v47_v1, %v31_v0  ;;  %v970_v16 = vpack.c.bf16 %v44_v4, %v28_v2 }
  0x21   :  { %873 = vmatpush1.msk.msra.mxu0 %vm135_vm0, %v116_v25  ;;  %v61_v9 = vld [vmem:[%s1457_s0 + $0x168] sm:$0xff]  ;;  %v122_v11 = vld [vmem:[%s1457_s0 + $0x350] sm:$0x3f]  ;;  %v79_v14 = vld [vmem:[%s1457_s0 + $0x1f8] sm:$0xff]  ;;  %833 = vperm.xlu0 %994, %v825_v6   ;;  %v982_v17 = vpack.c.bf16 %v46_v8, %v30_v5 }
  0x22   :  { %877 = vmatpush1.msk.msra.mxu1 %vm135_vm0, %v118_v28  ;;  %874 = vmatmul.mubr.msk.f32.vlgmr.msra.gmra.mrb[4].mxu0 %vm128_vm1, %v1138_v52  ;;  %v77_v10 = vld [vmem:[%s1457_s0 + $0x1e8] sm:$0xff]  ;;  %v60_v19 = vld [vmem:[%s1457_s0 + $0x160] sm:$0xff]  ;;  %v62_v21 = vld [vmem:[%s1457_s0 + $0x170] sm:$0xff]  ;;  %v984_v22 = vpack.c.bf16 %v79_v14, %v63_v13 }
  0x23   :  { %878 = vmatmul.mubr.msk.f32.vlgmr.msra.gmra.mrb[4].mxu1 %vm128_vm1, %v1138_v52  ;;  %945 = vmatprep.subr.bf16.mxu0 %v944_v29  ;;  %v972_v18 = vpack.c.bf16 %v77_v10, %v61_v9  ;;  %v76_v20 = vld [vmem:[%s1457_s0 + $0x1e0] sm:$0xff]  ;;  %v78_v23 = vld [vmem:[%s1457_s0 + $0x1f0] sm:$0xff]  ;;  %v93_v24 = vld [vmem:[%s1457_s0 + $0x268] sm:$0xff] }
  0x24   :  { %957 = vmatprep.subr.bf16.mxu1 %v956_v31  ;;  %947 = vmatpush1.bf16.msra.mxu0 %v946_v32  ;;  %v109_v25 = vld [vmem:[%s1457_s0 + $0x2e8] sm:$0xff]  ;;  %v95_v26 = vld [vmem:[%s1457_s0 + $0x278] sm:$0xff]  ;;  %v974_v28 = vpack.c.bf16 %v76_v20, %v60_v19  ;;  %v986_v29 = vpack.c.bf16 %v78_v23, %v62_v21  ;;  %v92_v31 = vld [vmem:[%s1457_s0 + $0x260] sm:$0xff] }
  0x25   :  { %959 = vmatpush1.bf16.msra.mxu1 %v958_v36  ;;  %408 = vmatprep.mubr.f32.mxu0 %v995_v3  ;;  %v111_v27 = vld [vmem:[%s1457_s0 + $0x2f8] sm:$0xff]  ;;  %v976_v30 = vpack.c.bf16 %v109_v25, %v93_v24  ;;  %v108_v32 = vld [vmem:[%s1457_s0 + $0x2e0] sm:$0xff]  ;;  %v94_v34 = vld [vmem:[%s1457_s0 + $0x270] sm:$0xff] }
  0x26   :  { %485 = vmatprep.mubr.f32.mxu1 %v995_v3  ;;  %875 = vmatmul.mubr.msk.f32.gmra.mrb[6].mxu0 %vm128_vm1, %v1179_v7  ;;  %v988_v33 = vpack.c.bf16 %v111_v27, %v95_v26  ;;  %v110_v35 = vld [vmem:[%s1457_s0 + $0x2f0] sm:$0xff]  ;;  %v978_v36 = vpack.c.bf16 %v108_v32, %v92_v31  ;;  %v125_v38 = vld [vmem:[%s1457_s0 + $0x368] sm:$0x3f]  ;;  %v127_v39 = vld [vmem:[%s1457_s0 + $0x378] sm:$0x3f] }
  0x27   :  { %879 = vmatmul.mubr.msk.f32.gmra.mrb[6].mxu1 %vm128_vm1, %v1179_v7  ;;  %949 = vmatprep.subr.bf16.mxu0 %v948_v43  ;;  %v990_v37 = vpack.c.bf16 %v110_v35, %v94_v34  ;;  %v124_v40 = vld [vmem:[%s1457_s0 + $0x360] sm:$0x3f]  ;;  %v126_v41 = vld [vmem:[%s1457_s0 + $0x370] sm:$0x3f] }
  0x28   :  { %961 = vmatprep.subr.bf16.mxu1 %v960_v46  ;;  %951 = vmatpush1.bf16.msra.mxu0 %v950_v47 }
  0x29   :  { %963 = vmatpush1.bf16.msra.mxu1 %v962_v48  ;;  %953 = vmatprep.subr.bf16.mxu0 %v952_v49 }
  0x2a   :  { %965 = vmatprep.subr.bf16.mxu1 %v964_v53  ;;  %556 = vmatprep.mubr.f32.mxu0 %v995_v3 }
  0x2b   :  { %633 = vmatprep.mubr.f32.mxu1 %v995_v3 }
  0x2c   :  { %955 = vmatpush1.bf16.msra.mxu0 %v954_v56 }
  0x2d   :  { %967 = vmatpush1.bf16.msra.mxu1 %v966_v58  ;;  %880 = vmatprep.subr.msk.mxu0 %vm135_vm0, %v121_v59 }
  0x2e   :  { %884 = vmatprep.subr.msk.mxu1 %vm135_vm0, %v123_v60 }
  0x30   :  { %881 = vmatpush1.msk.msra.mxu0 %vm135_vm0, %v120_v63 }
  0x31   :  { %885 = vmatpush1.msk.msra.mxu1 %vm135_vm0, %v122_v11  ;;  %882 = vmatmul.mubr.msk.f32.vlgmr.msra.gmra.mrb[8].mxu0 %vm128_vm1, %v1138_v52 }
  0x32   :  { %886 = vmatmul.mubr.msk.f32.vlgmr.msra.gmra.mrb[8].mxu1 %vm128_vm1, %v1138_v52  ;;  %969 = vmatprep.subr.bf16.mxu0 %v968_v12 }
  0x33   :  { %981 = vmatprep.subr.bf16.mxu1 %v980_v15  ;;  %971 = vmatpush1.bf16.msra.mxu0 %v970_v16 }
  0x34   :  { %983 = vmatpush1.bf16.msra.mxu1 %v982_v17  ;;  %973 = vmatprep.subr.bf16.mxu0 %v972_v18 }
  0x35   :  { %985 = vmatprep.subr.bf16.mxu1 %v984_v22  ;;  %562 = vmatprep.mubr.f32.mxu0 %v995_v3 }
  0x36   :  { %639 = vmatprep.mubr.f32.mxu1 %v995_v3  ;;  %883 = vmatmul.mubr.msk.f32.gmra.mrb[10].mxu0 %vm128_vm1, %v1179_v7 }
  0x37   :  { %975 = vmatpush1.bf16.msra.mxu0 %v974_v28  ;;  %887 = vmatmul.mubr.msk.f32.gmra.mrb[10].mxu1 %vm128_vm1, %v1179_v7 }
  0x38   :  { %987 = vmatpush1.bf16.msra.mxu1 %v986_v29  ;;  %977 = vmatprep.subr.bf16.mxu0 %v976_v30 }
  0x39   :  { %989 = vmatprep.subr.bf16.mxu1 %v988_v33  ;;  %710 = vmatprep.mubr.f32.mxu0 %v995_v3 }
  0x3a   :  { %787 = vmatprep.mubr.f32.mxu1 %v995_v3 }
  0x3b   :  { %979 = vmatpush1.bf16.msra.mxu0 %v978_v36 }
  0x3c   :  { %991 = vmatpush1.bf16.msra.mxu1 %v990_v37  ;;  %888 = vmatprep.subr.msk.mxu0 %vm135_vm0, %v125_v38 }
  0x3d   :  { %892 = vmatprep.subr.msk.mxu1 %vm135_vm0, %v127_v39 }
  0x3f   :  { %889 = vmatpush1.msk.msra.mxu0 %vm135_vm0, %v124_v40 }
  0x40   :  { %893 = vmatpush1.msk.msra.mxu1 %vm135_vm0, %v126_v41  ;;  %890 = vmatmul.mubr.msk.f32.vlgmr.msra.gmra.mrb[12].mxu0 %vm128_vm1, %v1138_v52 }
  0x41   :  { %894 = vmatmul.mubr.msk.f32.vlgmr.msra.gmra.mrb[12].mxu1 %vm128_vm1, %v1138_v52  ;;  %716 = vmatprep.mubr.f32.mxu0 %v995_v3 }
  0x42   :  { %793 = vmatprep.mubr.f32.mxu1 %v995_v3 }
  0x44   :  { %891 = vmatmul.mubr.msk.f32.gmra.mrb[14].mxu0 %vm128_vm1, %v1179_v7 }
  0x45   :  { %895 = vmatmul.mubr.msk.f32.gmra.mrb[14].mxu1 %vm128_vm1, %v1179_v7 }
  0x9c   :  { %v829_v17 = vpop.permute.xlu0 %828 }
  0xa0   :  { %v834_v41 = vpop.permute.xlu0 %833 }
  0xe6   :  { %v250_v42 = vpop.f32.mrb[0].mxu0 }
  0xe7   :  { %v327_v43 = vpop.f32.mrb[0].mxu1  ;;  %v252_v44 = vpop.f32.mrb[1].mxu0 }
  0xe8   :  { %v329_v45 = vpop.f32.mrb[1].mxu1 }
  0xeb   :  { %v256_v46 = vpop.f32.mrb[2].mxu0 }
  0xec   :  { %v333_v47 = vpop.f32.mrb[2].mxu1  ;;  %v258_v48 = vpop.f32.mrb[3].mxu0 }
  0xed   :  { %v335_v49 = vpop.f32.mrb[3].mxu1 }
  0xf5   :  { %v404_v50 = vpop.f32.mrb[4].mxu0 }
  0xf6   :  { %v800_v52 = vmax.f32 %v250_v42, %v404_v50  ;;  %v481_v51 = vpop.f32.mrb[4].mxu1  ;;  %v406_v53 = vpop.f32.mrb[5].mxu0 }
  0xf7   :  { %v802_v54 = vmax.f32 %v327_v43, %v481_v51  ;;  %v801_v3 = vmax.f32 %v252_v44, %v406_v53  ;;  %v483_v55 = vpop.f32.mrb[5].mxu1 }
  0xf8   :  { %v803_v56 = vmax.f32 %v329_v45, %v483_v55 }
  0xf9   :  { %v410_v57 = vpop.f32.mrb[6].mxu0 }
  0xfa   :  { %v804_v58 = vmax.f32 %v256_v46, %v410_v57  ;;  %v487_v59 = vpop.f32.mrb[6].mxu1  ;;  %v412_v7 = vpop.f32.mrb[7].mxu0 }
  0xfb   :  { %v806_v60 = vmax.f32 %v333_v47, %v487_v59  ;;  %v805_v61 = vmax.f32 %v258_v48, %v412_v7  ;;  %v489_v62 = vpop.f32.mrb[7].mxu1 }
  0xfc   :  { %v807_v63 = vmax.f32 %v335_v49, %v489_v62 }
 0x104   :  { %v558_v0 = vpop.f32.mrb[8].mxu0 }
 0x105   :  { %v635_v1 = vpop.f32.mrb[8].mxu1  ;;  %v560_v2 = vpop.f32.mrb[9].mxu0 }
 0x106   :  { %v637_v4 = vpop.f32.mrb[9].mxu1 }
 0x109   :  { %v564_v5 = vpop.f32.mrb[10].mxu0 }
 0x10a   :  { %v641_v6 = vpop.f32.mrb[10].mxu1  ;;  %v566_v8 = vpop.f32.mrb[11].mxu0 }
 0x10b   :  { %v643_v9 = vpop.f32.mrb[11].mxu1 }
 0x113   :  { %v712_v10 = vpop.f32.mrb[12].mxu0 }
 0x114   :  { %v808_v11 = vmax.f32 %v558_v0, %v712_v10  ;;  %v789_v12 = vpop.f32.mrb[12].mxu1  ;;  %v714_v13 = vpop.f32.mrb[13].mxu0 }
 0x115   :  { %v810_v14 = vmax.f32 %v635_v1, %v789_v12  ;;  %v809_v15 = vmax.f32 %v560_v2, %v714_v13  ;;  %v791_v16 = vpop.f32.mrb[13].mxu1 }
 0x116   :  { %v816_v18 = vmax.f32 %v800_v52, %v808_v11  ;;  %v811_v19 = vmax.f32 %v637_v4, %v791_v16 }
 0x117   :  { %v818_v20 = vmax.f32 %v802_v54, %v810_v14  ;;  %v817_v21 = vmax.f32 %v801_v3, %v809_v15  ;;  %v718_v22 = vpop.f32.mrb[14].mxu0 }
 0x118   :  { %v819_v23 = vmax.f32 %v803_v56, %v811_v19  ;;  %v836_v24 = vadd.f32 %v829_v17, %v816_v18  ;;  %v812_v25 = vmax.f32 %v564_v5, %v718_v22  ;;  %v795_v26 = vpop.f32.mrb[14].mxu1  ;;  %v720_v27 = vpop.f32.mrb[15].mxu0 }
 0x119   :  { %v837_v28 = vadd.f32 %v829_v17, %v817_v21  ;;  %v838_v29 = vadd.f32 %v829_v17, %v818_v20  ;;  %v814_v30 = vmax.f32 %v641_v6, %v795_v26  ;;  %v813_v31 = vmax.f32 %v566_v8, %v720_v27  ;;  %v797_v32 = vpop.f32.mrb[15].mxu1 }
 0x11a   :  { %v839_v33 = vadd.f32 %v829_v17, %v819_v23  ;;  %v844_v34 = vmax.f32 %v836_v24, 0.0  ;;  %v820_v35 = vmax.f32 %v804_v58, %v812_v25  ;;  %v815_v36 = vmax.f32 %v643_v9, %v797_v32 }
 0x11b   :  { %v845_v37 = vmax.f32 %v837_v28, 0.0  ;;  %v846_v38 = vmax.f32 %v838_v29, 0.0  ;;  %v822_v39 = vmax.f32 %v806_v60, %v814_v30  ;;  %v821_v40 = vmax.f32 %v805_v61, %v813_v31 }
 0x11c   :  { %v847_v42 = vmax.f32 %v839_v33, 0.0  ;;  %852 = vst [vmem:[%s1460_s3] sm:$0xff] %v844_v34  ;;  %v823_v43 = vmax.f32 %v807_v63, %v815_v36  ;;  %v840_v44 = vadd.f32 %v834_v41, %v820_v35 }
 0x11d   :  { %853 = vst [vmem:[%s1460_s3 + $0x8] sm:$0xff] %v845_v37  ;;  %854 = vst [vmem:[%s1460_s3 + $0x10] sm:$0xff] %v846_v38  ;;  %v841_v45 = vadd.f32 %v834_v41, %v821_v40  ;;  %v842_v46 = vadd.f32 %v834_v41, %v822_v39 }
 0x11e   :  { %855 = vst [vmem:[%s1460_s3 + $0x18] sm:$0xff] %v847_v42  ;;  %v843_v47 = vadd.f32 %v834_v41, %v823_v43  ;;  %v848_v48 = vmax.f32 %v840_v44, 0.0 }
 0x11f   :  { %v849_v49 = vmax.f32 %v841_v45, 0.0  ;;  %v850_v50 = vmax.f32 %v842_v46, 0.0 }
 0x120   :  { %v851_v52 = vmax.f32 %v843_v47, 0.0  ;;  %856 = vst [vmem:[%s1460_s3 + $0x20] sm:$0xf] %v848_v48 }
 0x121   :  { %857 = vst [vmem:[%s1460_s3 + $0x28] sm:$0xf] %v849_v49  ;;  %858 = vst [vmem:[%s1460_s3 + $0x30] sm:$0xf] %v850_v50 }
 0x122   :  { %859 = vst [vmem:[%s1460_s3 + $0x38] sm:$0xf] %v851_v52 }

// kernel: cnn_forward.6
= control target key start
LH: loop header
LB: loop body
LE: loop exit
PB: predicated region body
PF: predicated region fallthrough
CT: control target
= control target key end

     0   :  { %v417_v7 = vmov 0.0   ;;  %v418_v13 = vmov 0   ;;  %vm84_vm0 = vcmask 1043456   ;;  %s660_s0 = inlined_call_operand.vmem [shape: f32[108,512], index: 0, kind: input, shape index: {}]   ;;  %s661_s1 = inlined_call_operand.vmem [shape: f32[24,108], index: 1, kind: input, shape index: {}]   ;;  %s662_s2 = inlined_call_operand.vmem [shape: f32[24,1], index: 2, kind: input, shape index: {}]   ;;  %s663_s3 = inlined_call_operand.hbm [shape: f32[24,128], index: 3, kind: output, shape index: {}]  }
   0x1   :  { %v19_v0 = vld [vmem:[%s660_s0 + $0x8] sm:$0xff]  ;;  %v21_v2 = vld [vmem:[%s660_s0 + $0x18] sm:$0xff]  ;;  %v18_v5 = vld [vmem:[%s660_s0] sm:$0xff]  ;;  %161 = vmatprep.mubr.f32.mxu0 %v417_v7  ;;  %244 = vmatprep.mubr.f32.mxu1 %v417_v7 }
   0x2   :  { %v23_v1 = vld [vmem:[%s660_s0 + $0x28] sm:$0xff]  ;;  %v25_v4 = vld [vmem:[%s660_s0 + $0x38] sm:$0xff]  ;;  %v22_v6 = vld [vmem:[%s660_s0 + $0x20] sm:$0xff]  ;;  %391 = vset.pattern.permute.xlu0 %v418_v13  ;;  %392 = vset.pattern.permute.xlu1 %v418_v13 }
   0x3   :  { %v325_v3 = vpack.c.bf16 %v23_v1, %v19_v0  ;;  %v355_v8 = vpack.c.bf16 %v25_v4, %v21_v2  ;;  %v327_v9 = vpack.c.bf16 %v22_v6, %v18_v5  ;;  %v20_v10 = vld [vmem:[%s660_s0 + $0x10] sm:$0xff]  ;;  %v27_v12 = vld [vmem:[%s660_s0 + $0x48] sm:$0xff]  ;;  %v29_v16 = vld [vmem:[%s660_s0 + $0x58] sm:$0xff] }
   0x4   :  { %v24_v11 = vld [vmem:[%s660_s0 + $0x30] sm:$0xff]  ;;  %v31_v15 = vld [vmem:[%s660_s0 + $0x68] sm:$0xff]  ;;  %v33_v17 = vld [vmem:[%s660_s0 + $0x78] sm:$0xff] }
   0x5   :  { %326 = vmatprep.subr.bf16.mxu0 %v325_v3  ;;  %v357_v14 = vpack.c.bf16 %v24_v11, %v20_v10  ;;  %356 = vmatprep.subr.bf16.mxu1 %v355_v8  ;;  %v329_v18 = vpack.c.bf16 %v31_v15, %v27_v12  ;;  %v359_v19 = vpack.c.bf16 %v33_v17, %v29_v16  ;;  %v26_v20 = vld [vmem:[%s660_s0 + $0x40] sm:$0xff]  ;;  %v28_v22 = vld [vmem:[%s660_s0 + $0x50] sm:$0xff]  ;;  %v35_v25 = vld [vmem:[%s660_s0 + $0x88] sm:$0xff] }
   0x6   :  { %328 = vmatpush1.bf16.msra.mxu0 %v327_v9  ;;  %v30_v21 = vld [vmem:[%s660_s0 + $0x60] sm:$0xff]  ;;  %v32_v24 = vld [vmem:[%s660_s0 + $0x70] sm:$0xff]  ;;  %v39_v26 = vld [vmem:[%s660_s0 + $0xa8] sm:$0xff] }
   0x7   :  { %358 = vmatpush1.bf16.msra.mxu1 %v357_v14  ;;  %v331_v23 = vpack.c.bf16 %v30_v21, %v26_v20  ;;  %330 = vmatprep.subr.bf16.mxu0 %v329_v18  ;;  %v361_v27 = vpack.c.bf16 %v32_v24, %v28_v22  ;;  %v333_v28 = vpack.c.bf16 %v39_v26, %v35_v25  ;;  %v37_v29 = vld [vmem:[%s660_s0 + $0x98] sm:$0xff]  ;;  %v34_v31 = vld [vmem:[%s660_s0 + $0x80] sm:$0xff]  ;;  %v36_v34 = vld [vmem:[%s660_s0 + $0x90] sm:$0xff] }
   0x8   :  { %360 = vmatprep.subr.bf16.mxu1 %v359_v19  ;;  %v41_v30 = vld [vmem:[%s660_s0 + $0xb8] sm:$0xff]  ;;  %v38_v33 = vld [vmem:[%s660_s0 + $0xa0] sm:$0xff]  ;;  %v40_v35 = vld [vmem:[%s660_s0 + $0xb0] sm:$0xff] }
   0x9   :  { %v363_v32 = vpack.c.bf16 %v41_v30, %v37_v29  ;;  %v335_v36 = vpack.c.bf16 %v38_v33, %v34_v31  ;;  %v43_v37 = vld [vmem:[%s660_s0 + $0xc8] sm:$0xff]  ;;  %v45_v39 = vld [vmem:[%s660_s0 + $0xd8] sm:$0xff]  ;;  %v365_v40 = vpack.c.bf16 %v40_v35, %v36_v34  ;;  %v42_v43 = vld [vmem:[%s660_s0 + $0xc0] sm:$0xff] }
   0xa   :  { %332 = vmatpush1.bf16.msra.mxu0 %v331_v23  ;;  %v47_v38 = vld [vmem:[%s660_s0 + $0xe8] sm:$0xff]  ;;  %v49_v42 = vld [vmem:[%s660_s0 + $0xf8] sm:$0xff]  ;;  %v46_v44 = vld [vmem:[%s660_s0 + $0xe0] sm:$0xff] }
   0xb   :  { %362 = vmatpush1.bf16.msra.mxu1 %v361_v27  ;;  %334 = vmatprep.subr.bf16.mxu0 %v333_v28  ;;  %v337_v41 = vpack.c.bf16 %v47_v38, %v43_v37  ;;  %v367_v45 = vpack.c.bf16 %v49_v42, %v45_v39  ;;  %v44_v46 = vld [vmem:[%s660_s0 + $0xd0] sm:$0xff]  ;;  %v51_v48 = vld [vmem:[%s660_s0 + $0x108] sm:$0xff]  ;;  %v53_v50 = vld [vmem:[%s660_s0 + $0x118] sm:$0xff]  ;;  %v339_v52 = vpack.c.bf16 %v46_v44, %v42_v43 }
   0xc   :  { %364 = vmatprep.subr.bf16.mxu1 %v363_v32  ;;  %v48_v47 = vld [vmem:[%s660_s0 + $0xf0] sm:$0xff]  ;;  %v55_v49 = vld [vmem:[%s660_s0 + $0x128] sm:$0xff]  ;;  %v57_v51 = vld [vmem:[%s660_s0 + $0x138] sm:$0xff] }
   0xd   :  { %v369_v53 = vpack.c.bf16 %v48_v47, %v44_v46  ;;  %v341_v54 = vpack.c.bf16 %v55_v49, %v51_v48  ;;  %v50_v55 = vld [vmem:[%s660_s0 + $0x100] sm:$0xff]  ;;  %v52_v57 = vld [vmem:[%s660_s0 + $0x110] sm:$0xff]  ;;  %v371_v58 = vpack.c.bf16 %v57_v51, %v53_v50  ;;  %v59_v60 = vld [vmem:[%s660_s0 + $0x148] sm:$0xff] }
   0xe   :  { %336 = vmatpush1.bf16.msra.mxu0 %v335_v36  ;;  %v54_v56 = vld [vmem:[%s660_s0 + $0x120] sm:$0xff]  ;;  %v56_v59 = vld [vmem:[%s660_s0 + $0x130] sm:$0xff]  ;;  %v63_v61 = vld [vmem:[%s660_s0 + $0x168] sm:$0xff] }
   0xf   :  { %366 = vmatpush1.bf16.msra.mxu1 %v365_v40  ;;  %338 = vmatprep.subr.bf16.mxu0 %v337_v41  ;;  %v61_v62 = vld [vmem:[%s660_s0 + $0x158] sm:$0xff]  ;;  %v343_v0 = vpack.c.bf16 %v54_v56, %v50_v55  ;;  %v373_v1 = vpack.c.bf16 %v56_v59, %v52_v57  ;;  %v345_v2 = vpack.c.bf16 %v63_v61, %v59_v60  ;;  %v58_v3 = vld [vmem:[%s660_s0 + $0x140] sm:$0xff]  ;;  %v60_v5 = vld [vmem:[%s660_s0 + $0x150] sm:$0xff] }
  0x10   :  { %368 = vmatprep.subr.bf16.mxu1 %v367_v45  ;;  %v65_v63 = vld [vmem:[%s660_s0 + $0x178] sm:$0xff]  ;;  %v62_v4 = vld [vmem:[%s660_s0 + $0x160] sm:$0xff]  ;;  %v64_v8 = vld [vmem:[%s660_s0 + $0x170] sm:$0xff] }
  0x11   :  { %v375_v6 = vpack.c.bf16 %v65_v63, %v61_v62  ;;  %v67_v9 = vld [vmem:[%s660_s0 + $0x188] sm:$0xff]  ;;  %v69_v11 = vld [vmem:[%s660_s0 + $0x198] sm:$0xff]  ;;  %v347_v13 = vpack.c.bf16 %v62_v4, %v58_v3  ;;  %v272_v14 = vld [vmem:[%s662_s2] sm:$0xff]  ;;  %v377_v16 = vpack.c.bf16 %v64_v8, %v60_v5 }
  0x12   :  { %340 = vmatpush1.bf16.msra.mxu0 %v339_v52  ;;  %v71_v10 = vld [vmem:[%s660_s0 + $0x1a8] sm:$0xf]  ;;  %v73_v12 = vld [vmem:[%s660_s0 + $0x1b8] sm:$0xf]  ;;  %v274_v15 = vld [vmem:[%s662_s2 + $0x10] sm:$0xff] }
  0x13   :  { %370 = vmatpush1.bf16.msra.mxu1 %v369_v53  ;;  %342 = vmatprep.subr.bf16.mxu0 %v341_v54  ;;  %v349_v17 = vpack.c.bf16 %v71_v10, %v67_v9  ;;  %v66_v18 = vld [vmem:[%s660_s0 + $0x180] sm:$0xff] }
  0x14   :  { %372 = vmatprep.subr.bf16.mxu1 %v371_v58  ;;  %v70_v19 = vld [vmem:[%s660_s0 + $0x1a0] sm:$0xf] }
  0x16   :  { %344 = vmatpush1.bf16.msra.mxu0 %v343_v0 }
  0x17   :  { %374 = vmatpush1.bf16.msra.mxu1 %v373_v1  ;;  %346 = vmatprep.subr.bf16.mxu0 %v345_v2 }
  0x18   :  { %8 = vsyncpa [#allocation3], 0  ;;  %376 = vmatprep.subr.bf16.mxu1 %v375_v6  ;;  %vm419_vm1 = vmmov 1   ;;  %v379_v21 = vpack.c.bf16 %v73_v12, %v69_v11  ;;  %v68_v22 = vld [vmem:[%s660_s0 + $0x190] sm:$0xff]  ;;  %277 = vperm.xlu0 %391, %v272_v14   ;;  %v273_v24 = vld [vmem:[%s662_s2 + $0x8] sm:$0xff]  ;;  %v352_v25 = vpack.c.bf16 %v70_v19, %v66_v18  ;;  %vm74_vm3 = vcmask 883712  }
  0x19   :  { %vm614_vm2 = vmpackc.low %vm84_vm0, %vm419_vm1  ;;  %v72_v23 = vld [vmem:[%s660_s0 + $0x1b0] sm:$0xf]  ;;  %287 = vperm.xlu1 %392, %v274_v15   ;;  %v15_v27 = vld [vmem:[%s661_s1] sm:$0xff] }
  0x1a   :  { %348 = vmatpush1.bf16.msra.mxu0 %v347_v13  ;;  %v382_v26 = vpack.c.bf16 %v72_v23, %v68_v22  ;;  %v16_v28 = vld [vmem:[%s661_s1 + $0x8] sm:$0xff]  ;;  %v17_v29 = vld [vmem:[%s661_s1 + $0x10] sm:$0xff]  ;;  %s420_s1 = smov [#allocation2]  }
  0x1b   :  { %378 = vmatpush1.bf16.msra.mxu1 %v377_v16  ;;  %351 = vmatprep.subr.msk.bf16.mxu0 %vm614_vm2, %v349_v17  ;;  %s304_s26 = sshll.u32 %s420_s1, 4  ;;  %s305_s26 = int_to_ptr.vmem [resolvable:$true] %s304_s26 }
  0x1c   :  { %381 = vmatprep.subr.msk.bf16.mxu1 %vm614_vm2, %v379_v21  ;;  %282 = vperm.xlu0 %391, %v273_v24   ;;  %s393_s27 = scalar_lea.vmem %s305_s26, 384  ;;  %p398_p1 = scmp.lt.s32.totalorder %s305_s26, %s305_s26 }
  0x1d   :  { %p394_p0 = scmp.ne.s32.totalorder %s305_s26, %s393_s27  ;;  %p399_p2 = scmp.lt.s32.totalorder %s393_s27, %s393_s27 }
  0x1e   :  { %354 = vmatpush1.bf16.msk.msra.mxu0 %vm614_vm2, %v352_v25 }
  0x1f   :  { %384 = vmatpush1.bf16.msk.msra.mxu1 %vm614_vm2, %v382_v26  ;;  %p400_p3 = por %p399_p2, %p398_p1 }
  0x21   :  { %317 = vmatmul.mubr.msk.f32.vlgmr.msra.gmra.mrb[0].mxu0 %vm74_vm3, %v15_v27  ;;  %p401_p4 = pnand %p400_p3, %p394_p0 }
  0x22   :  { %322 = vmatmul.mubr.msk.f32.vlgmr.msra.gmra.mrb[0].mxu1 %vm74_vm3, %v15_v27  ;;  %167 = vmatprep.mubr.f32.mxu0 %v417_v7 }
  0x23   :  { %250 = vmatprep.mubr.f32.mxu1 %v417_v7 }
  0x25   :  { %318 = vmatmul.mubr.msk.f32.gmra.mrb[2].mxu0 %vm74_vm3, %v16_v28 }
  0x26   :  { %323 = vmatmul.mubr.msk.f32.gmra.mrb[2].mxu1 %vm74_vm3, %v16_v28  ;;  %173 = vmatprep.mubr.f32.mxu0 %v417_v7 }
  0x27   :  { %256 = vmatprep.mubr.f32.mxu1 %v417_v7 }
  0x29   :  { %319 = vmatmul.mubr.msk.f32.gmra.mrb[4].mxu0 %vm74_vm3, %v17_v29 }
  0x2a   :  { %324 = vmatmul.mubr.msk.f32.gmra.mrb[4].mxu1 %vm74_vm3, %v17_v29 }
  0x97   :  { %v278_v35 = vpop.permute.xlu0 %277 }
  0x98   :  { %v288_v54 = vpop.permute.xlu1 %287 }
  0x9b   :  { %v283_v46 = vpop.permute.xlu0 %282 }
  0xf4   :  { %v163_v30 = vpop.f32.mrb[0].mxu0 }
  0xf5   :  { %v246_v31 = vpop.f32.mrb[0].mxu1  ;;  %v165_v32 = vpop.f32.mrb[1].mxu0 }
  0xf6   :  { %v263_v33 = vmax.f32 %v163_v30, %v165_v32  ;;  %v248_v34 = vpop.f32.mrb[1].mxu1 }
  0xf7   :  { %v266_v36 = vmax.f32 %v246_v31, %v248_v34 }
  0xf8   :  { %v169_v37 = vpop.f32.mrb[2].mxu0 }
  0xf9   :  { %v252_v38 = vpop.f32.mrb[2].mxu1  ;;  %v269_v39 = vmax.f32 %v263_v33, %v266_v36  ;;  %v171_v40 = vpop.f32.mrb[3].mxu0 }
  0xfa   :  { %v264_v41 = vmax.f32 %v169_v37, %v171_v40  ;;  %v254_v42 = vpop.f32.mrb[3].mxu1 }
  0xfb   :  { %v290_v43 = vadd.f32 %v278_v35, %v269_v39  ;;  %v267_v44 = vmax.f32 %v252_v38, %v254_v42 }
  0xfc   :  { %v175_v45 = vpop.f32.mrb[4].mxu0 }
  0xfd   :  { %v293_v7 = vmax.f32 %v290_v43, 0.0  ;;  %v258_v47 = vpop.f32.mrb[4].mxu1  ;;  %v270_v48 = vmax.f32 %v264_v41, %v267_v44  ;;  %v177_v49 = vpop.f32.mrb[5].mxu0 }
  0xfe   :  { %v265_v50 = vmax.f32 %v175_v45, %v177_v49  ;;  %v260_v51 = vpop.f32.mrb[5].mxu1 }
  0xff   :  { %296 = vst [vmem:[#allocation2] sm:$0xff] %v293_v7  ;;  %v291_v52 = vadd.f32 %v283_v46, %v270_v48  ;;  %v268_v53 = vmax.f32 %v258_v47, %v260_v51 }
 0x101   :  { %v294_v55 = vmax.f32 %v291_v52, 0.0  ;;  %v271_v56 = vmax.f32 %v265_v50, %v268_v53 }
 0x103   :  { %297 = vst [vmem:[#allocation2 + $0x8] sm:$0xff] %v294_v55  ;;  %v292_v57 = vadd.f32 %v288_v54, %v271_v56 }
 0x105   :  { %v295_v58 = vmax.f32 %v292_v57, 0.0 }
 0x107   :  { %298 = vst [vmem:[#allocation2 + $0x10] sm:$0xff] %v295_v58 }
 0x108   :  { %404 = shalt.err (!%p401_p4)
}
 0x109   :  { %s405_s30 = scalar_lea.hbm %s663_s3, 384 }
 0x10a   :  { %p406_p5 = scmp.ne.s32.totalorder %s663_s3, %s405_s30  ;;  %p409_p6 = scmp.lt.u32.totalorder %s405_s30, %s663_s3 }
 0x10c   :  { %p411_p7 = pnand %p409_p6, %p406_p5 }
 0x10e   :  { %414 = shalt.err (!%p411_p7)
}
 0x10f   :  { %s421_s8 = smov 128   ;;  %s422_s9 = smov 8  }
 0x110   :  { %310 = dma.vmem_to_hbm [thread:$0]  %s305_s26, 384, %s663_s3, [#allocation3], %s421_s8, %s421_s8, %s422_s9  }
 0x111   :  { %415 = dma.done.wait [#allocation3], 384  }
 0x112   :  { %416 = vsyncadd [#allocation3], 4294966912 }
 0x113   :  { %314 = vsyncpa [#allocation3], 1 }

// kernel: cnn_forward.7
= control target key start
LH: loop header
LB: loop body
LE: loop exit
PB: predicated region body
PF: predicated region fallthrough
CT: control target
= control target key end

     0   :  { %v255_v26 = vlaneseq  ;;  %v1219_v27 = vmov 1983009808   ;;  %s2138_s0 = inlined_call_operand.vmem [shape: f32[2,896], index: 0, kind: input, shape index: {}]   ;;  %s2139_s1 = inlined_call_operand.vmem [shape: f32[896,256], index: 1, kind: input, shape index: {}]   ;;  %s2140_s2 = inlined_call_operand.vmem [shape: f32[1,256], index: 2, kind: input, shape index: {}]   ;;  %s2141_s3 = inlined_call_operand.vmem [shape: f32[256,128], index: 3, kind: input, shape index: {}]   ;;  %s2142_s4 = inlined_call_operand.vmem [shape: f32[1,128], index: 4, kind: input, shape index: {}]   ;;  %s2143_s5 = inlined_call_operand.vmem [shape: f32[128,128], index: 5, kind: input, shape index: {}]   ;;  %s2144_s6 = inlined_call_operand.vmem [shape: f32[1,128], index: 6, kind: input, shape index: {}]   ;;  %s2145_s7 = inlined_call_operand.hbm [shape: f32[2,128], index: 7, kind: output, shape index: {}]  }
   0x1   :  { %v94_v0 = vld [vmem:[%s2139_s1 + $0x208] sm:$0xff]  ;;  %v96_v1 = vld [vmem:[%s2139_s1 + $0x218] sm:$0xff]  ;;  %v93_v2 = vld [vmem:[%s2139_s1 + $0x200] sm:$0xff]  ;;  %v269_v28 = vunpack.c.l.s4 %v1219_v27 }
   0x2   :  { %v964_v3 = vpack.c.bf16 %v96_v1, %v94_v0  ;;  %v95_v4 = vld [vmem:[%s2139_s1 + $0x210] sm:$0xff]  ;;  %v98_v5 = vld [vmem:[%s2139_s1 + $0x228] sm:$0xff]  ;;  %v100_v6 = vld [vmem:[%s2139_s1 + $0x238] sm:$0xff]  ;;  %v1330_v35 = vshrl.u32 %v255_v26, 7 }
   0x3   :  { %v966_v7 = vpack.c.bf16 %v95_v4, %v93_v2  ;;  %v968_v8 = vpack.c.bf16 %v100_v6, %v98_v5  ;;  %v97_v9 = vld [vmem:[%s2139_s1 + $0x220] sm:$0xff]  ;;  %v99_v10 = vld [vmem:[%s2139_s1 + $0x230] sm:$0xff]  ;;  %v102_v11 = vld [vmem:[%s2139_s1 + $0x248] sm:$0xff]  ;;  %v270_v36 = vunpack.c.0.s8 %v269_v28 }
   0x4   :  { %965 = vmatprep.subr.bf16.mxu0 %v964_v3  ;;  %v104_v12 = vld [vmem:[%s2139_s1 + $0x258] sm:$0xff]  ;;  %v970_v13 = vpack.c.bf16 %v99_v10, %v97_v9  ;;  %v101_v15 = vld [vmem:[%s2139_s1 + $0x240] sm:$0xff]  ;;  %v103_v16 = vld [vmem:[%s2139_s1 + $0x250] sm:$0xff] }
   0x5   :  { %967 = vmatpush1.bf16.msra.mxu0 %v966_v7  ;;  %v972_v14 = vpack.c.bf16 %v104_v12, %v102_v11  ;;  %v106_v17 = vld [vmem:[%s2139_s1 + $0x268] sm:$0xff]  ;;  %v108_v18 = vld [vmem:[%s2139_s1 + $0x278] sm:$0xff]  ;;  %v974_v19 = vpack.c.bf16 %v103_v16, %v101_v15  ;;  %v105_v21 = vld [vmem:[%s2139_s1 + $0x260] sm:$0xff]  ;;  %v1345_v43 = vsub.s32 %v270_v36, %v1330_v35 }
   0x6   :  { %969 = vmatprep.subr.bf16.mxu0 %v968_v8  ;;  %v976_v20 = vpack.c.bf16 %v108_v18, %v106_v17  ;;  %v107_v22 = vld [vmem:[%s2139_s1 + $0x270] sm:$0xff]  ;;  %v110_v23 = vld [vmem:[%s2139_s1 + $0x288] sm:$0xff]  ;;  %v112_v24 = vld [vmem:[%s2139_s1 + $0x298] sm:$0xff] }
   0x7   :  { %v978_v25 = vpack.c.bf16 %v107_v22, %v105_v21  ;;  %v980_v29 = vpack.c.bf16 %v112_v24, %v110_v23  ;;  %v109_v30 = vld [vmem:[%s2139_s1 + $0x280] sm:$0xff]  ;;  %v111_v31 = vld [vmem:[%s2139_s1 + $0x290] sm:$0xff]  ;;  %v114_v32 = vld [vmem:[%s2139_s1 + $0x2a8] sm:$0xff] }
   0x8   :  { %v116_v33 = vld [vmem:[%s2139_s1 + $0x2b8] sm:$0xff]  ;;  %v982_v34 = vpack.c.bf16 %v111_v31, %v109_v30  ;;  %v113_v38 = vld [vmem:[%s2139_s1 + $0x2a0] sm:$0xff]  ;;  %v115_v39 = vld [vmem:[%s2139_s1 + $0x2b0] sm:$0xff] }
   0x9   :  { %971 = vmatpush1.bf16.msra.mxu0 %v970_v13  ;;  %v984_v37 = vpack.c.bf16 %v116_v33, %v114_v32  ;;  %v118_v40 = vld [vmem:[%s2139_s1 + $0x2c8] sm:$0xff]  ;;  %v120_v41 = vld [vmem:[%s2139_s1 + $0x2d8] sm:$0xff]  ;;  %v986_v42 = vpack.c.bf16 %v115_v39, %v113_v38  ;;  %v117_v45 = vld [vmem:[%s2139_s1 + $0x2c0] sm:$0xff] }
   0xa   :  { %973 = vmatprep.subr.bf16.mxu0 %v972_v14  ;;  %v988_v44 = vpack.c.bf16 %v120_v41, %v118_v40  ;;  %v119_v46 = vld [vmem:[%s2139_s1 + $0x2d0] sm:$0xff]  ;;  %v27_v47 = vld [vmem:[%s2138_s0] sm:$0xff]  ;;  %v122_v48 = vld [vmem:[%s2139_s1 + $0x2e8] sm:$0xff] }
   0xb   :  { %v124_v49 = vld [vmem:[%s2139_s1 + $0x2f8] sm:$0xff]  ;;  %v267_v50 = vcombine.high %v27_v47, %v27_v47  ;;  %v990_v51 = vpack.c.bf16 %v119_v46, %v117_v45  ;;  %v121_v54 = vld [vmem:[%s2139_s1 + $0x2e0] sm:$0xff]  ;;  %v123_v55 = vld [vmem:[%s2139_s1 + $0x2f0] sm:$0xff]  ;;  %v1380_v59 = vrot.slane %v27_v47, %v1345_v43 }
   0xc   :  { %v992_v53 = vpack.c.bf16 %v124_v49, %v122_v48  ;;  %v126_v56 = vld [vmem:[%s2139_s1 + $0x308] sm:$0xff]  ;;  %v128_v57 = vld [vmem:[%s2139_s1 + $0x318] sm:$0xff]  ;;  %v994_v60 = vpack.c.bf16 %v123_v55, %v121_v54  ;;  %v125_v62 = vld [vmem:[%s2139_s1 + $0x300] sm:$0xff] }
   0xd   :  { %975 = vmatpush1.bf16.msra.mxu0 %v974_v19  ;;  %v1363_v52 = vrot.slane %v267_v50, %v1345_v43  ;;  %v996_v61 = vpack.c.bf16 %v128_v57, %v126_v56  ;;  %v127_v63 = vld [vmem:[%s2139_s1 + $0x310] sm:$0xff]  ;;  %v282_v0 = vcombine.high %v1380_v59, %v1380_v59  ;;  %v130_v1 = vld [vmem:[%s2139_s1 + $0x328] sm:$0xff]  ;;  %v132_v2 = vld [vmem:[%s2139_s1 + $0x338] sm:$0xff] }
   0xe   :  { %977 = vmatprep.subr.bf16.mxu0 %v976_v20  ;;  %v30_v3 = vld [vmem:[%s2139_s1 + $0x8] sm:$0xff]  ;;  %v998_v4 = vpack.c.bf16 %v127_v63, %v125_v62  ;;  %v129_v5 = vld [vmem:[%s2139_s1 + $0x320] sm:$0xff]  ;;  %v131_v6 = vld [vmem:[%s2139_s1 + $0x330] sm:$0xff]  ;;  %v1000_v8 = vpack.c.bf16 %v132_v2, %v130_v1 }
   0xf   :  { %v283_v58 = vcombine.high %v1363_v52, %v1363_v52  ;;  %371 = vmatprep.mubr.f32.mxu1 %v282_v0  ;;  %v32_v7 = vld [vmem:[%s2139_s1 + $0x18] sm:$0xff]  ;;  %v134_v9 = vld [vmem:[%s2139_s1 + $0x348] sm:$0xff]  ;;  %v29_v11 = vld [vmem:[%s2139_s1] sm:$0xff]  ;;  %v1002_v19 = vpack.c.bf16 %v131_v6, %v129_v5 }
  0x10   :  { %v900_v10 = vpack.c.bf16 %v32_v7, %v30_v3  ;;  %v31_v12 = vld [vmem:[%s2139_s1 + $0x10] sm:$0xff]  ;;  %v136_v13 = vld [vmem:[%s2139_s1 + $0x358] sm:$0xff]  ;;  %v34_v15 = vld [vmem:[%s2139_s1 + $0x28] sm:$0xff] }
  0x11   :  { %979 = vmatpush1.bf16.msra.mxu0 %v978_v25  ;;  %442 = vmatprep.mubr.f32.mxu0 %v283_v58  ;;  %v902_v14 = vpack.c.bf16 %v31_v12, %v29_v11  ;;  %v36_v16 = vld [vmem:[%s2139_s1 + $0x38] sm:$0xff]  ;;  %v33_v18 = vld [vmem:[%s2139_s1 + $0x20] sm:$0xff]  ;;  %v135_v21 = vld [vmem:[%s2139_s1 + $0x350] sm:$0xff]  ;;  %v1004_v23 = vpack.c.bf16 %v136_v13, %v134_v9 }
  0x12   :  { %981 = vmatprep.subr.bf16.mxu0 %v980_v29  ;;  %901 = vmatprep.subr.bf16.mxu1 %v900_v10  ;;  %v904_v17 = vpack.c.bf16 %v36_v16, %v34_v15  ;;  %v133_v20 = vld [vmem:[%s2139_s1 + $0x340] sm:$0xff]  ;;  %v35_v22 = vld [vmem:[%s2139_s1 + $0x30] sm:$0xff]  ;;  %v138_v24 = vld [vmem:[%s2139_s1 + $0x368] sm:$0xff] }
  0x13   :  { %903 = vmatpush1.bf16.msra.mxu1 %v902_v14  ;;  %v906_v25 = vpack.c.bf16 %v35_v22, %v33_v18  ;;  %v38_v26 = vld [vmem:[%s2139_s1 + $0x48] sm:$0xff]  ;;  %v40_v27 = vld [vmem:[%s2139_s1 + $0x58] sm:$0xff]  ;;  %v37_v30 = vld [vmem:[%s2139_s1 + $0x40] sm:$0xff]  ;;  %v1006_v33 = vpack.c.bf16 %v135_v21, %v133_v20 }
  0x14   :  { %905 = vmatprep.subr.bf16.mxu1 %v904_v17  ;;  %v140_v28 = vld [vmem:[%s2139_s1 + $0x378] sm:$0xff]  ;;  %v908_v29 = vpack.c.bf16 %v40_v27, %v38_v26  ;;  %v39_v31 = vld [vmem:[%s2139_s1 + $0x50] sm:$0xff]  ;;  %v42_v32 = vld [vmem:[%s2139_s1 + $0x68] sm:$0xff] }
  0x15   :  { %983 = vmatpush1.bf16.msra.mxu0 %v982_v34  ;;  %v137_v34 = vld [vmem:[%s2139_s1 + $0x360] sm:$0xff]  ;;  %v139_v36 = vld [vmem:[%s2139_s1 + $0x370] sm:$0xff]  ;;  %v44_v38 = vld [vmem:[%s2139_s1 + $0x78] sm:$0xff]  ;;  %v1008_v39 = vpack.c.bf16 %v140_v28, %v138_v24 }
  0x16   :  { %985 = vmatprep.subr.bf16.mxu0 %v984_v37  ;;  %v910_v37 = vpack.c.bf16 %v39_v31, %v37_v30  ;;  %v142_v40 = vld [vmem:[%s2139_s1 + $0x388] sm:$0xff]  ;;  %v912_v41 = vpack.c.bf16 %v44_v38, %v42_v32  ;;  %v144_v45 = vld [vmem:[%s2139_s1 + $0x398] sm:$0xff]  ;;  %v1010_v48 = vpack.c.bf16 %v139_v36, %v137_v34  ;;  %v141_v49 = vld [vmem:[%s2139_s1 + $0x380] sm:$0xff] }
  0x17   :  { %907 = vmatpush1.bf16.msra.mxu1 %v906_v25  ;;  %v46_v46 = vld [vmem:[%s2139_s1 + $0x88] sm:$0xff]  ;;  %v48_v47 = vld [vmem:[%s2139_s1 + $0x98] sm:$0xff]  ;;  %v143_v50 = vld [vmem:[%s2139_s1 + $0x390] sm:$0xff] }
  0x18   :  { %909 = vmatprep.subr.bf16.mxu1 %v908_v29  ;;  %v146_v54 = vld [vmem:[%s2139_s1 + $0x3a8] sm:$0xff]  ;;  %v916_v55 = vpack.c.bf16 %v48_v47, %v46_v46  ;;  %v45_v56 = vld [vmem:[%s2139_s1 + $0x80] sm:$0xff]  ;;  %v47_v57 = vld [vmem:[%s2139_s1 + $0x90] sm:$0xff]  ;;  %v1014_v62 = vpack.c.bf16 %v143_v50, %v141_v49 }
  0x19   :  { %987 = vmatpush1.bf16.msra.mxu0 %v986_v42  ;;  %v41_v42 = vld [vmem:[%s2139_s1 + $0x60] sm:$0xff]  ;;  %v148_v58 = vld [vmem:[%s2139_s1 + $0x3b8] sm:$0xff]  ;;  %v147_v0 = vld [vmem:[%s2139_s1 + $0x3b0] sm:$0xff]  ;;  %v918_v1 = vpack.c.bf16 %v47_v57, %v45_v56 }
  0x1a   :  { %989 = vmatprep.subr.bf16.mxu0 %v988_v44  ;;  %v43_v44 = vld [vmem:[%s2139_s1 + $0x70] sm:$0xff]  ;;  %v145_v63 = vld [vmem:[%s2139_s1 + $0x3a0] sm:$0xff]  ;;  %v1016_v2 = vpack.c.bf16 %v148_v58, %v146_v54  ;;  %v150_v3 = vld [vmem:[%s2139_s1 + $0x3c8] sm:$0xff] }
  0x1b   :  { %911 = vmatpush1.bf16.msra.mxu1 %v910_v37  ;;  %v49_v5 = vld [vmem:[%s2139_s1 + $0xa0] sm:$0xff]  ;;  %v51_v6 = vld [vmem:[%s2139_s1 + $0xb0] sm:$0xff]  ;;  %v152_v7 = vld [vmem:[%s2139_s1 + $0x3d8] sm:$0xff]  ;;  %v1018_v10 = vpack.c.bf16 %v147_v0, %v145_v63 }
  0x1c   :  { %913 = vmatprep.subr.bf16.mxu1 %v912_v41  ;;  %v56_v9 = vld [vmem:[%s2139_s1 + $0xd8] sm:$0xff]  ;;  %v149_v11 = vld [vmem:[%s2139_s1 + $0x3c0] sm:$0xff]  ;;  %v151_v12 = vld [vmem:[%s2139_s1 + $0x3d0] sm:$0xff]  ;;  %v922_v13 = vpack.c.bf16 %v51_v6, %v49_v5  ;;  %v1020_v14 = vpack.c.bf16 %v152_v7, %v150_v3 }
  0x1d   :  { %991 = vmatpush1.bf16.msra.mxu0 %v990_v51  ;;  %v914_v51 = vpack.c.bf16 %v43_v44, %v41_v42  ;;  %v154_v15 = vld [vmem:[%s2139_s1 + $0x3e8] sm:$0xff]  ;;  %v53_v17 = vld [vmem:[%s2139_s1 + $0xc0] sm:$0xff]  ;;  %v55_v18 = vld [vmem:[%s2139_s1 + $0xd0] sm:$0xff] }
  0x1e   :  { %993 = vmatprep.subr.bf16.mxu0 %v992_v53  ;;  %v1012_v53 = vpack.c.bf16 %v144_v45, %v142_v40  ;;  %v58_v20 = vld [vmem:[%s2139_s1 + $0xe8] sm:$0xff]  ;;  %v60_v21 = vld [vmem:[%s2139_s1 + $0xf8] sm:$0xff]  ;;  %v153_v24 = vld [vmem:[%s2139_s1 + $0x3e0] sm:$0xff]  ;;  %v926_v26 = vpack.c.bf16 %v55_v18, %v53_v17 }
  0x1f   :  { %915 = vmatpush1.bf16.msra.mxu1 %v914_v51  ;;  %v28_v22 = vld [vmem:[%s2138_s0 + $0x8] sm:$0x3f]  ;;  %v155_v25 = vld [vmem:[%s2139_s1 + $0x3f0] sm:$0xff]  ;;  %v928_v30 = vpack.c.bf16 %v60_v21, %v58_v20  ;;  %v57_v31 = vld [vmem:[%s2139_s1 + $0xe0] sm:$0xff] }
  0x20   :  { %917 = vmatprep.subr.bf16.mxu1 %v916_v55  ;;  %v284_v27 = vcombine.high %v28_v22, %v28_v22  ;;  %v158_v29 = vld [vmem:[%s2139_s1 + $0x408] sm:$0xff]  ;;  %v59_v32 = vld [vmem:[%s2139_s1 + $0xf0] sm:$0xff]  ;;  %v64_v36 = vld [vmem:[%s2139_s1 + $0x118] sm:$0xff]  ;;  %v1026_v38 = vpack.c.bf16 %v155_v25, %v153_v24  ;;  %v1601_v47 = vrot.slane %v28_v22, %v1345_v43 }
  0x21   :  { %995 = vmatpush1.bf16.msra.mxu0 %v994_v60  ;;  %v50_v60 = vld [vmem:[%s2139_s1 + $0xa8] sm:$0xff]  ;;  %v930_v40 = vpack.c.bf16 %v59_v32, %v57_v31  ;;  %v159_v42 = vld [vmem:[%s2139_s1 + $0x410] sm:$0xff]  ;;  %v61_v45 = vld [vmem:[%s2139_s1 + $0x100] sm:$0xff] }
  0x22   :  { %997 = vmatprep.subr.bf16.mxu0 %v996_v61  ;;  %v52_v61 = vld [vmem:[%s2139_s1 + $0xb8] sm:$0xff]  ;;  %v62_v34 = vld [vmem:[%s2139_s1 + $0x108] sm:$0xff]  ;;  %v1586_v37 = vrot.slane %v284_v27, %v1345_v43  ;;  %v63_v46 = vld [vmem:[%s2139_s1 + $0x110] sm:$0xff]  ;;  %v299_v58 = vcombine.high %v1601_v47, %v1601_v47 }
  0x23   :  { %919 = vmatpush1.bf16.msra.mxu1 %v918_v1  ;;  %v932_v44 = vpack.c.bf16 %v64_v36, %v62_v34  ;;  %v164_v49 = vld [vmem:[%s2139_s1 + $0x438] sm:$0xff]  ;;  %v66_v50 = vld [vmem:[%s2139_s1 + $0x128] sm:$0xff]  ;;  %v161_v43 = vld [vmem:[%s2139_s1 + $0x420] sm:$0xff]  ;;  %v934_v55 = vpack.c.bf16 %v63_v46, %v61_v45 }
  0x24   :  { %v68_v51 = vld [vmem:[%s2139_s1 + $0x138] sm:$0xff]  ;;  %v163_v54 = vld [vmem:[%s2139_s1 + $0x430] sm:$0xff]  ;;  %v166_v57 = vld [vmem:[%s2139_s1 + $0x448] sm:$0xff] }
  0x25   :  { %999 = vmatpush1.bf16.msra.mxu0 %v998_v4  ;;  %v920_v4 = vpack.c.bf16 %v52_v61, %v50_v60  ;;  %v65_v60 = vld [vmem:[%s2139_s1 + $0x120] sm:$0xff]  ;;  %v67_v61 = vld [vmem:[%s2139_s1 + $0x130] sm:$0xff]  ;;  %v936_v63 = vpack.c.bf16 %v68_v51, %v66_v50  ;;  %v70_v0 = vld [vmem:[%s2139_s1 + $0x148] sm:$0xff] }
  0x26   :  { %1001 = vmatprep.subr.bf16.mxu0 %v1000_v8  ;;  %v54_v8 = vld [vmem:[%s2139_s1 + $0xc8] sm:$0xff]  ;;  %v72_v1 = vld [vmem:[%s2139_s1 + $0x158] sm:$0xff]  ;;  %v165_v3 = vld [vmem:[%s2139_s1 + $0x440] sm:$0xff]  ;;  %v938_v5 = vpack.c.bf16 %v67_v61, %v65_v60 }
  0x27   :  { %921 = vmatprep.subr.bf16.mxu1 %v920_v4  ;;  %v924_v16 = vpack.c.bf16 %v56_v9, %v54_v8  ;;  %v167_v4 = vld [vmem:[%s2139_s1 + $0x450] sm:$0xff]  ;;  %v170_v7 = vld [vmem:[%s2139_s1 + $0x468] sm:$0xff]  ;;  %v69_v8 = vld [vmem:[%s2139_s1 + $0x140] sm:$0xff] }
  0x28   :  { %923 = vmatpush1.bf16.msra.mxu1 %v922_v13  ;;  %v71_v9 = vld [vmem:[%s2139_s1 + $0x150] sm:$0xff]  ;;  %v1038_v13 = vpack.c.bf16 %v167_v4, %v165_v3  ;;  %v174_v18 = vld [vmem:[%s2139_s1 + $0x488] sm:$0xff]  ;;  %v73_v20 = vld [vmem:[%s2139_s1 + $0x160] sm:$0xff] }
  0x29   :  { %1003 = vmatpush1.bf16.msra.mxu0 %v1002_v19  ;;  %v156_v19 = vld [vmem:[%s2139_s1 + $0x3f8] sm:$0xff]  ;;  %925 = vmatprep.subr.bf16.mxu1 %v924_v16  ;;  %v942_v16 = vpack.c.bf16 %v71_v9, %v69_v8  ;;  %v75_v21 = vld [vmem:[%s2139_s1 + $0x170] sm:$0xff]  ;;  %v77_v32 = vld [vmem:[%s2139_s1 + $0x180] sm:$0xff] }
  0x2a   :  { %1005 = vmatprep.subr.bf16.mxu0 %v1004_v23  ;;  %v1022_v23 = vpack.c.bf16 %v151_v12, %v149_v11  ;;  %v1024_v28 = vpack.c.bf16 %v156_v19, %v154_v15  ;;  %v74_v11 = vld [vmem:[%s2139_s1 + $0x168] sm:$0xff]  ;;  %v76_v12 = vld [vmem:[%s2139_s1 + $0x178] sm:$0xff]  ;;  %v171_v15 = vld [vmem:[%s2139_s1 + $0x470] sm:$0xff] }
  0x2b   :  { %v944_v19 = vpack.c.bf16 %v76_v12, %v74_v11  ;;  %v176_v22 = vld [vmem:[%s2139_s1 + $0x498] sm:$0xff]  ;;  %v175_v27 = vld [vmem:[%s2139_s1 + $0x490] sm:$0xff]  ;;  %v82_v36 = vld [vmem:[%s2139_s1 + $0x1a8] sm:$0xff] }
  0x2c   :  { %927 = vmatpush1.bf16.msra.mxu1 %v926_v26  ;;  %v80_v24 = vld [vmem:[%s2139_s1 + $0x198] sm:$0xff]  ;;  %v173_v26 = vld [vmem:[%s2139_s1 + $0x480] sm:$0xff]  ;;  %v182_v45 = vld [vmem:[%s2139_s1 + $0x4c8] sm:$0xff] }
  0x2d   :  { %1007 = vmatpush1.bf16.msra.mxu0 %v1006_v33  ;;  %v160_v33 = vld [vmem:[%s2139_s1 + $0x418] sm:$0xff]  ;;  %929 = vmatprep.subr.bf16.mxu1 %v928_v30  ;;  %v178_v30 = vld [vmem:[%s2139_s1 + $0x4a8] sm:$0xff] }
  0x2e   :  { %1009 = vmatprep.subr.bf16.mxu0 %v1008_v39  ;;  %v157_v39 = vld [vmem:[%s2139_s1 + $0x400] sm:$0xff]  ;;  %v1028_v41 = vpack.c.bf16 %v160_v33, %v158_v29  ;;  %v1044_v29 = vpack.c.bf16 %v176_v22, %v174_v18  ;;  %v79_v33 = vld [vmem:[%s2139_s1 + $0x190] sm:$0xff]  ;;  %v180_v34 = vld [vmem:[%s2139_s1 + $0x4b8] sm:$0xff] }
  0x2f   :  { %v184_v50 = vld [vmem:[%s2139_s1 + $0x4d8] sm:$0xff]  ;;  %v86_v51 = vld [vmem:[%s2139_s1 + $0x1c8] sm:$0xff] }
  0x30   :  { %931 = vmatpush1.bf16.msra.mxu1 %v930_v40  ;;  %v177_v40 = vld [vmem:[%s2139_s1 + $0x4a0] sm:$0xff] }
  0x31   :  { %1011 = vmatpush1.bf16.msra.mxu0 %v1010_v48  ;;  %v162_v48 = vld [vmem:[%s2139_s1 + $0x428] sm:$0xff]  ;;  %933 = vmatprep.subr.bf16.mxu1 %v932_v44  ;;  %v1048_v44 = vpack.c.bf16 %v180_v34, %v178_v30 }
  0x32   :  { %1013 = vmatprep.subr.bf16.mxu0 %v1012_v53  ;;  %v1030_v53 = vpack.c.bf16 %v159_v42, %v157_v39  ;;  %v1032_v56 = vpack.c.bf16 %v164_v49, %v162_v48  ;;  %v1046_v39 = vpack.c.bf16 %v175_v27, %v173_v26  ;;  %v950_v42 = vpack.c.bf16 %v79_v33, %v77_v32  ;;  %v81_v48 = vld [vmem:[%s2139_s1 + $0x1a0] sm:$0xff]  ;;  %v83_v49 = vld [vmem:[%s2139_s1 + $0x1b0] sm:$0xff] }
  0x34   :  { %935 = vmatpush1.bf16.msra.mxu1 %v934_v55 }
  0x35   :  { %1015 = vmatpush1.bf16.msra.mxu0 %v1014_v62  ;;  %v168_v62 = vld [vmem:[%s2139_s1 + $0x458] sm:$0xff]  ;;  %937 = vmatprep.subr.bf16.mxu1 %v936_v63 }
  0x36   :  { %1017 = vmatprep.subr.bf16.mxu0 %v1016_v2  ;;  %v1034_v2 = vpack.c.bf16 %v163_v54, %v161_v43  ;;  %v1036_v6 = vpack.c.bf16 %v168_v62, %v166_v57 }
  0x38   :  { %939 = vmatpush1.bf16.msra.mxu1 %v938_v5 }
  0x39   :  { %1019 = vmatpush1.bf16.msra.mxu0 %v1018_v10  ;;  %v172_v10 = vld [vmem:[%s2139_s1 + $0x478] sm:$0xff] }
  0x3a   :  { %1021 = vmatprep.subr.bf16.mxu0 %v1020_v14  ;;  %v169_v14 = vld [vmem:[%s2139_s1 + $0x460] sm:$0xff]  ;;  %v1040_v17 = vpack.c.bf16 %v172_v10, %v170_v7 }
  0x3b   :  { %v1042_v25 = vpack.c.bf16 %v171_v15, %v169_v14 }
  0x3d   :  { %1023 = vmatpush1.bf16.msra.mxu0 %v1022_v23  ;;  %v78_v23 = vld [vmem:[%s2139_s1 + $0x188] sm:$0xff] }
  0x3e   :  { %1025 = vmatprep.subr.bf16.mxu0 %v1024_v28  ;;  %v946_v28 = vpack.c.bf16 %v75_v21, %v73_v20  ;;  %v948_v31 = vpack.c.bf16 %v80_v24, %v78_v23 }
  0x41   :  { %1027 = vmatpush1.bf16.msra.mxu0 %v1026_v38  ;;  %v84_v38 = vld [vmem:[%s2139_s1 + $0x1b8] sm:$0xff] }
  0x42   :  { %1029 = vmatprep.subr.bf16.mxu0 %v1028_v41  ;;  %v179_v41 = vld [vmem:[%s2139_s1 + $0x4b0] sm:$0xff]  ;;  %v952_v46 = vpack.c.bf16 %v84_v38, %v82_v36 }
  0x44   :  { %443 = vmatmul.mubr.f32.vlgmr.msra.gmra.mrb[0].mxu0 %v1363_v52  ;;  %v940_v52 = vpack.c.bf16 %v72_v1, %v70_v0 }
  0x45   :  { %1031 = vmatpush1.bf16.msra.mxu0 %v1030_v53  ;;  %513 = vmatprep.mubr.f32.mxu0 %v299_v58  ;;  %v88_v53 = vld [vmem:[%s2139_s1 + $0x1d8] sm:$0xff] }
  0x46   :  { %1033 = vmatprep.subr.bf16.mxu0 %v1032_v56  ;;  %941 = vmatprep.subr.bf16.mxu1 %v940_v52 }
  0x47   :  { %943 = vmatpush1.bf16.msra.mxu1 %v942_v16 }
  0x48   :  { %945 = vmatprep.subr.bf16.mxu1 %v944_v19 }
  0x49   :  { %1035 = vmatpush1.bf16.msra.mxu0 %v1034_v2 }
  0x4a   :  { %1037 = vmatprep.subr.bf16.mxu0 %v1036_v6 }
  0x4b   :  { %947 = vmatpush1.bf16.msra.mxu1 %v946_v28 }
  0x4c   :  { %949 = vmatprep.subr.bf16.mxu1 %v948_v31 }
  0x4d   :  { %1039 = vmatpush1.bf16.msra.mxu0 %v1038_v13 }
  0x4e   :  { %1041 = vmatprep.subr.bf16.mxu0 %v1040_v17 }
  0x51   :  { %1043 = vmatpush1.bf16.msra.mxu0 %v1042_v25 }
  0x52   :  { %1045 = vmatprep.subr.bf16.mxu0 %v1044_v29 }
  0x53   :  { %12 = vsyncpa [#allocation3], 0  ;;  %v1050_v43 = vpack.c.bf16 %v179_v41, %v177_v40  ;;  %v181_v54 = vld [vmem:[%s2139_s1 + $0x4c0] sm:$0xff]  ;;  %v183_v55 = vld [vmem:[%s2139_s1 + $0x4d0] sm:$0xff]  ;;  %951 = vmatpush1.bf16.msra.mxu1 %v950_v42  ;;  %v954_v56 = vpack.c.bf16 %v83_v49, %v81_v48  ;;  %v1052_v57 = vpack.c.bf16 %v184_v50, %v182_v45  ;;  %v956_v60 = vpack.c.bf16 %v88_v53, %v86_v51 }
  0x54   :  { %v186_v58 = vld [vmem:[%s2139_s1 + $0x4e8] sm:$0xff]  ;;  %953 = vmatprep.subr.bf16.mxu1 %v952_v46  ;;  %v85_v61 = vld [vmem:[%s2139_s1 + $0x1c0] sm:$0xff]  ;;  %v87_v62 = vld [vmem:[%s2139_s1 + $0x1d0] sm:$0xff]  ;;  %v1054_v2 = vpack.c.bf16 %v183_v55, %v181_v54  ;;  %vm1222_vm0 = vmmov 0  }
  0x55   :  { %1047 = vmatpush1.bf16.msra.mxu0 %v1046_v39  ;;  %v188_v63 = vld [vmem:[%s2139_s1 + $0x4f8] sm:$0xff]  ;;  %v90_v0 = vld [vmem:[%s2139_s1 + $0x1e8] sm:$0xff]  ;;  %v185_v3 = vld [vmem:[%s2139_s1 + $0x4e0] sm:$0xff]  ;;  %v958_v5 = vpack.c.bf16 %v87_v62, %v85_v61 }
  0x56   :  { %1049 = vmatprep.subr.bf16.mxu0 %v1048_v44  ;;  %v92_v1 = vld [vmem:[%s2139_s1 + $0x1f8] sm:$0xff]  ;;  %v187_v4 = vld [vmem:[%s2139_s1 + $0x4f0] sm:$0xff]  ;;  %v1056_v6 = vpack.c.bf16 %v188_v63, %v186_v58  ;;  %v190_v7 = vld [vmem:[%s2139_s1 + $0x508] sm:$0xff] }
  0x57   :  { %955 = vmatpush1.bf16.msra.mxu1 %v954_v56  ;;  %v960_v52 = vpack.c.bf16 %v92_v1, %v90_v0  ;;  %v89_v8 = vld [vmem:[%s2139_s1 + $0x1e0] sm:$0xff]  ;;  %v91_v9 = vld [vmem:[%s2139_s1 + $0x1f0] sm:$0xff]  ;;  %v192_v10 = vld [vmem:[%s2139_s1 + $0x518] sm:$0xff]  ;;  %v1058_v13 = vpack.c.bf16 %v187_v4, %v185_v3 }
  0x58   :  { %957 = vmatprep.subr.bf16.mxu1 %v956_v60  ;;  %v609_v11 = vld [vmem:[%s2141_s3 + $0x80] sm:$0xff]  ;;  %v610_v12 = vld [vmem:[%s2141_s3 + $0x88] sm:$0xff]  ;;  %v191_v15 = vld [vmem:[%s2139_s1 + $0x510] sm:$0xff]  ;;  %v962_v16 = vpack.c.bf16 %v91_v9, %v89_v8  ;;  %v1060_v17 = vpack.c.bf16 %v192_v10, %v190_v7 }
  0x59   :  { %1051 = vmatpush1.bf16.msra.mxu0 %v1050_v43  ;;  %v189_v14 = vld [vmem:[%s2139_s1 + $0x500] sm:$0xff]  ;;  %v194_v18 = vld [vmem:[%s2139_s1 + $0x528] sm:$0xff]  ;;  %v1124_v19 = vpack.c.bf16 %v610_v12, %v609_v11  ;;  %v196_v22 = vld [vmem:[%s2139_s1 + $0x538] sm:$0xff] }
  0x5a   :  { %1053 = vmatprep.subr.bf16.mxu0 %v1052_v57  ;;  %v593_v20 = vld [vmem:[%s2141_s3] sm:$0xff]  ;;  %v594_v21 = vld [vmem:[%s2141_s3 + $0x8] sm:$0xff]  ;;  %v611_v23 = vld [vmem:[%s2141_s3 + $0x90] sm:$0xff]  ;;  %v1062_v25 = vpack.c.bf16 %v191_v15, %v189_v14  ;;  %v1064_v29 = vpack.c.bf16 %v196_v22, %v194_v18 }
  0x5b   :  { %959 = vmatpush1.bf16.msra.mxu1 %v958_v5  ;;  %v612_v24 = vld [vmem:[%s2141_s3 + $0x98] sm:$0xff]  ;;  %v193_v26 = vld [vmem:[%s2139_s1 + $0x520] sm:$0xff]  ;;  %v195_v27 = vld [vmem:[%s2139_s1 + $0x530] sm:$0xff]  ;;  %v1126_v28 = vpack.c.bf16 %v594_v21, %v593_v20 }
  0x5c   :  { %961 = vmatprep.subr.bf16.mxu1 %v960_v52  ;;  %v198_v30 = vld [vmem:[%s2139_s1 + $0x548] sm:$0xff]  ;;  %v1128_v31 = vpack.c.bf16 %v612_v24, %v611_v23  ;;  %v595_v32 = vld [vmem:[%s2141_s3 + $0x10] sm:$0xff]  ;;  %v596_v33 = vld [vmem:[%s2141_s3 + $0x18] sm:$0xff]  ;;  %v1066_v39 = vpack.c.bf16 %v195_v27, %v193_v26 }
  0x5d   :  { %1055 = vmatpush1.bf16.msra.mxu0 %v1054_v2  ;;  %v200_v34 = vld [vmem:[%s2139_s1 + $0x558] sm:$0xff]  ;;  %v613_v36 = vld [vmem:[%s2141_s3 + $0xa0] sm:$0xff]  ;;  %v614_v38 = vld [vmem:[%s2141_s3 + $0xa8] sm:$0xff]  ;;  %v1130_v42 = vpack.c.bf16 %v596_v33, %v595_v32 }
  0x5e   :  { %1057 = vmatprep.subr.bf16.mxu0 %v1056_v6  ;;  %v197_v40 = vld [vmem:[%s2139_s1 + $0x540] sm:$0xff]  ;;  %v199_v41 = vld [vmem:[%s2139_s1 + $0x550] sm:$0xff]  ;;  %v1068_v44 = vpack.c.bf16 %v200_v34, %v198_v30  ;;  %v202_v45 = vld [vmem:[%s2139_s1 + $0x568] sm:$0xff] }
  0x5f   :  { %963 = vmatpush1.bf16.msra.mxu1 %v962_v16  ;;  %v597_v46 = vld [vmem:[%s2141_s3 + $0x20] sm:$0xff]  ;;  %v598_v48 = vld [vmem:[%s2141_s3 + $0x28] sm:$0xff]  ;;  %v204_v49 = vld [vmem:[%s2139_s1 + $0x578] sm:$0xff]  ;;  %v1070_v53 = vpack.c.bf16 %v199_v41, %v197_v40 }
  0x60   :  { %1125 = vmatprep.subr.bf16.mxu1 %v1124_v19  ;;  %v615_v50 = vld [vmem:[%s2141_s3 + $0xb0] sm:$0xff]  ;;  %v616_v51 = vld [vmem:[%s2141_s3 + $0xb8] sm:$0xff]  ;;  %v201_v43 = vld [vmem:[%s2139_s1 + $0x560] sm:$0xff]  ;;  %v1134_v55 = vpack.c.bf16 %v598_v48, %v597_v46  ;;  %v1072_v56 = vpack.c.bf16 %v204_v49, %v202_v45 }
  0x61   :  { %1059 = vmatpush1.bf16.msra.mxu0 %v1058_v13  ;;  %v203_v54 = vld [vmem:[%s2139_s1 + $0x570] sm:$0xff]  ;;  %v206_v57 = vld [vmem:[%s2139_s1 + $0x588] sm:$0xff]  ;;  %v1136_v58 = vpack.c.bf16 %v616_v51, %v615_v50  ;;  %v600_v61 = vld [vmem:[%s2141_s3 + $0x38] sm:$0xff]  ;;  %v1220_v51 = vmov 0.0  }
  0x62   :  { %1061 = vmatprep.subr.bf16.mxu0 %v1060_v17  ;;  %372 = vmatmul.mubr.f32.vlgmr.msra.gmra.mrb[0].mxu1 %v1380_v59  ;;  %v1132_v59 = vpack.c.bf16 %v614_v38, %v613_v36  ;;  %v599_v60 = vld [vmem:[%s2141_s3 + $0x30] sm:$0xff]  ;;  %v208_v62 = vld [vmem:[%s2139_s1 + $0x598] sm:$0xff]  ;;  %v617_v63 = vld [vmem:[%s2141_s3 + $0xc0] sm:$0xff]  ;;  %v1074_v1 = vpack.c.bf16 %v203_v54, %v201_v43 }
  0x63   :  { %1127 = vmatpush3.bf16.msra.mxu1 %v1126_v28  ;;  %v618_v0 = vld [vmem:[%s2141_s3 + $0xc8] sm:$0xff]  ;;  %v205_v2 = vld [vmem:[%s2139_s1 + $0x580] sm:$0xff]  ;;  %v207_v3 = vld [vmem:[%s2139_s1 + $0x590] sm:$0xff]  ;;  %v1138_v4 = vpack.c.bf16 %v600_v61, %v599_v60  ;;  %v1076_v5 = vpack.c.bf16 %v208_v62, %v206_v57 }
  0x64   :  { %1129 = vmatprep.subr.bf16.mxu1 %v1128_v31  ;;  %v210_v6 = vld [vmem:[%s2139_s1 + $0x5a8] sm:$0xff]  ;;  %v1140_v7 = vpack.c.bf16 %v618_v0, %v617_v63  ;;  %v601_v52 = vld [vmem:[%s2141_s3 + $0x40] sm:$0xff]  ;;  %v212_v9 = vld [vmem:[%s2139_s1 + $0x5b8] sm:$0xff]  ;;  %v1078_v12 = vpack.c.bf16 %v207_v3, %v205_v2 }
  0x65   :  { %1063 = vmatpush1.bf16.msra.mxu0 %v1062_v25  ;;  %v602_v8 = vld [vmem:[%s2141_s3 + $0x48] sm:$0xff]  ;;  %v619_v10 = vld [vmem:[%s2141_s3 + $0xd0] sm:$0xff]  ;;  %v620_v11 = vld [vmem:[%s2141_s3 + $0xd8] sm:$0xff]  ;;  %v1080_v15 = vpack.c.bf16 %v212_v9, %v210_v6 }
  0x66   :  { %1065 = vmatprep.subr.bf16.mxu0 %v1064_v29  ;;  %v209_v13 = vld [vmem:[%s2139_s1 + $0x5a0] sm:$0xff]  ;;  %v1142_v14 = vpack.c.bf16 %v602_v8, %v601_v52  ;;  %v211_v16 = vld [vmem:[%s2139_s1 + $0x5b0] sm:$0xff]  ;;  %v1144_v17 = vpack.c.bf16 %v620_v11, %v619_v10  ;;  %v604_v19 = vld [vmem:[%s2141_s3 + $0x58] sm:$0xff] }
  0x67   :  { %1131 = vmatpush3.bf16.msra.mxu1 %v1130_v42  ;;  %v603_v18 = vld [vmem:[%s2141_s3 + $0x50] sm:$0xff]  ;;  %v214_v20 = vld [vmem:[%s2139_s1 + $0x5c8] sm:$0xff]  ;;  %v216_v21 = vld [vmem:[%s2139_s1 + $0x5d8] sm:$0xff]  ;;  %v1082_v22 = vpack.c.bf16 %v211_v16, %v209_v13 }
  0x68   :  { %1133 = vmatprep.subr.bf16.mxu1 %v1132_v59  ;;  %v1146_v23 = vpack.c.bf16 %v604_v19, %v603_v18  ;;  %v1084_v24 = vpack.c.bf16 %v216_v21, %v214_v20  ;;  %v213_v25 = vld [vmem:[%s2139_s1 + $0x5c0] sm:$0xff]  ;;  %v215_v26 = vld [vmem:[%s2139_s1 + $0x5d0] sm:$0xff]  ;;  %v218_v27 = vld [vmem:[%s2139_s1 + $0x5e8] sm:$0xff] }
  0x69   :  { %1067 = vmatpush1.bf16.msra.mxu0 %v1066_v39  ;;  %v220_v28 = vld [vmem:[%s2139_s1 + $0x5f8] sm:$0xff]  ;;  %v1086_v29 = vpack.c.bf16 %v215_v26, %v213_v25  ;;  %v217_v31 = vld [vmem:[%s2139_s1 + $0x5e0] sm:$0xff]  ;;  %v219_v32 = vld [vmem:[%s2139_s1 + $0x5f0] sm:$0xff] }
  0x6a   :  { %1069 = vmatprep.subr.bf16.mxu0 %v1068_v44  ;;  %v1088_v30 = vpack.c.bf16 %v220_v28, %v218_v27  ;;  %v222_v33 = vld [vmem:[%s2139_s1 + $0x608] sm:$0xff]  ;;  %v224_v34 = vld [vmem:[%s2139_s1 + $0x618] sm:$0xff]  ;;  %v1090_v36 = vpack.c.bf16 %v219_v32, %v217_v31  ;;  %v221_v39 = vld [vmem:[%s2139_s1 + $0x600] sm:$0xff]  ;;  %v1221_v32 = vmov 0.0|0.0  }
  0x6b   :  { %1135 = vmatpush3.bf16.msra.mxu1 %v1134_v55  ;;  %v1092_v38 = vpack.c.bf16 %v224_v34, %v222_v33  ;;  %v223_v40 = vld [vmem:[%s2139_s1 + $0x610] sm:$0xff]  ;;  %v226_v41 = vld [vmem:[%s2139_s1 + $0x628] sm:$0xff]  ;;  %v228_v42 = vld [vmem:[%s2139_s1 + $0x638] sm:$0xff] }
  0x6c   :  { %1137 = vmatprep.subr.bf16.mxu1 %v1136_v58  ;;  %v1094_v44 = vpack.c.bf16 %v223_v40, %v221_v39  ;;  %v1096_v45 = vpack.c.bf16 %v228_v42, %v226_v41  ;;  %v225_v59 = vld [vmem:[%s2139_s1 + $0x620] sm:$0xff]  ;;  %v227_v46 = vld [vmem:[%s2139_s1 + $0x630] sm:$0xff]  ;;  %v230_v48 = vld [vmem:[%s2139_s1 + $0x648] sm:$0xff]  ;;  %v261_v39 = vsub.s32 1, %v1330_v35 }
  0x6d   :  { %1071 = vmatpush1.bf16.msra.mxu0 %v1070_v53  ;;  %v232_v49 = vld [vmem:[%s2139_s1 + $0x658] sm:$0xff]  ;;  %v1098_v50 = vpack.c.bf16 %v227_v46, %v225_v59  ;;  %v229_v43 = vld [vmem:[%s2139_s1 + $0x640] sm:$0xff]  ;;  %v231_v54 = vld [vmem:[%s2139_s1 + $0x650] sm:$0xff] }
  0x6e   :  { %1073 = vmatprep.subr.bf16.mxu0 %v1072_v56  ;;  %v1100_v53 = vpack.c.bf16 %v232_v49, %v230_v48  ;;  %v234_v55 = vld [vmem:[%s2139_s1 + $0x668] sm:$0xff]  ;;  %v1102_v56 = vpack.c.bf16 %v231_v54, %v229_v43  ;;  %v233_v58 = vld [vmem:[%s2139_s1 + $0x660] sm:$0xff]  ;;  %v235_v60 = vld [vmem:[%s2139_s1 + $0x670] sm:$0xff] }
  0x6f   :  { %1139 = vmatpush3.bf16.msra.mxu1 %v1138_v4  ;;  %v238_v61 = vld [vmem:[%s2139_s1 + $0x688] sm:$0xff]  ;;  %v240_v62 = vld [vmem:[%s2139_s1 + $0x698] sm:$0xff]  ;;  %v1106_v63 = vpack.c.bf16 %v235_v60, %v233_v58  ;;  %v239_v2 = vld [vmem:[%s2139_s1 + $0x690] sm:$0xff] }
  0x70   :  { %1141 = vmatprep.subr.bf16.mxu1 %v1140_v7  ;;  %v1108_v0 = vpack.c.bf16 %v240_v62, %v238_v61  ;;  %v242_v3 = vld [vmem:[%s2139_s1 + $0x6a8] sm:$0xff]  ;;  %v244_v4 = vld [vmem:[%s2139_s1 + $0x6b8] sm:$0xff]  ;;  %v241_v7 = vld [vmem:[%s2139_s1 + $0x6a0] sm:$0xff] }
  0x71   :  { %1075 = vmatpush1.bf16.msra.mxu0 %v1074_v1  ;;  %v237_v1 = vld [vmem:[%s2139_s1 + $0x680] sm:$0xff]  ;;  %v1112_v6 = vpack.c.bf16 %v244_v4, %v242_v3  ;;  %v243_v52 = vld [vmem:[%s2139_s1 + $0x6b0] sm:$0xff]  ;;  %v246_v8 = vld [vmem:[%s2139_s1 + $0x6c8] sm:$0xff] }
  0x72   :  { %1077 = vmatprep.subr.bf16.mxu0 %v1076_v5  ;;  %v1110_v5 = vpack.c.bf16 %v239_v2, %v237_v1  ;;  %v248_v9 = vld [vmem:[%s2139_s1 + $0x6d8] sm:$0xff]  ;;  %v1114_v10 = vpack.c.bf16 %v243_v52, %v241_v7  ;;  %v247_v13 = vld [vmem:[%s2139_s1 + $0x6d0] sm:$0xff]  ;;  %v249_v18 = vld [vmem:[%s2139_s1 + $0x6e0] sm:$0xff] }
  0x73   :  { %1143 = vmatpush3.bf16.msra.mxu1 %v1142_v14  ;;  %v1116_v11 = vpack.c.bf16 %v248_v9, %v246_v8  ;;  %v250_v14 = vld [vmem:[%s2139_s1 + $0x6e8] sm:$0xff]  ;;  %v251_v19 = vld [vmem:[%s2139_s1 + $0x6f0] sm:$0xff]  ;;  %v621_v21 = vld [vmem:[%s2141_s3 + $0xe0] sm:$0xff] }
  0x74   :  { %1145 = vmatprep.subr.bf16.mxu1 %v1144_v17  ;;  %v1122_v20 = vpack.c.bf16 %v251_v19, %v249_v18  ;;  %v606_v25 = vld [vmem:[%s2141_s3 + $0x68] sm:$0xff]  ;;  %v624_v27 = vld [vmem:[%s2141_s3 + $0xf8] sm:$0xff]  ;;  %v703_v48 = vld [vmem:[%s2143_s5] sm:$0xff] }
  0x75   :  { %1079 = vmatpush1.bf16.msra.mxu0 %v1078_v12  ;;  %v245_v12 = vld [vmem:[%s2139_s1 + $0x6c0] sm:$0xff]  ;;  %v704_v49 = vld [vmem:[%s2143_s5 + $0x8] sm:$0xff]  ;;  %v709_v60 = vld [vmem:[%s2143_s5 + $0x30] sm:$0xff] }
  0x76   :  { %1081 = vmatprep.subr.bf16.mxu0 %v1080_v15  ;;  %v252_v15 = vld [vmem:[%s2139_s1 + $0x6f8] sm:$0xff]  ;;  %v1118_v16 = vpack.c.bf16 %v247_v13, %v245_v12  ;;  %v1157_v43 = vpack.c.bf16 %v704_v49, %v703_v48  ;;  %v713_v2 = vld [vmem:[%s2143_s5 + $0x50] sm:$0xff] }
  0x77   :  { %1147 = vmatpush3.bf16.msra.mxu1 %v1146_v23  ;;  %v1120_v17 = vpack.c.bf16 %v252_v15, %v250_v14  ;;  %v710_v61 = vld [vmem:[%s2143_s5 + $0x38] sm:$0xff]  ;;  %v717_v52 = vld [vmem:[%s2143_s5 + $0x70] sm:$0xff] }
  0x78   :  { %v1166_v62 = vpack.c.bf16 %v710_v61, %v709_v60  ;;  %v714_v3 = vld [vmem:[%s2143_s5 + $0x58] sm:$0xff] }
  0x79   :  { %1083 = vmatpush1.bf16.msra.mxu0 %v1082_v22  ;;  %v622_v22 = vld [vmem:[%s2141_s3 + $0xe8] sm:$0xff]  ;;  %v1172_v4 = vpack.c.bf16 %v714_v3, %v713_v2  ;;  %v718_v8 = vld [vmem:[%s2143_s5 + $0x78] sm:$0xff] }
  0x7a   :  { %1085 = vmatprep.subr.bf16.mxu0 %v1084_v24  ;;  %v1148_v23 = vpack.c.bf16 %v622_v22, %v621_v21  ;;  %v605_v24 = vld [vmem:[%s2141_s3 + $0x60] sm:$0xff]  ;;  %v1178_v9 = vpack.c.bf16 %v718_v8, %v717_v52 }
  0x7b   :  { %v1150_v26 = vpack.c.bf16 %v606_v25, %v605_v24 }
  0x7c   :  { %1149 = vmatprep.subr.bf16.mxu1 %v1148_v23 }
  0x7d   :  { %1087 = vmatpush1.bf16.msra.mxu0 %v1086_v29  ;;  %1151 = vmatpush3.bf16.msra.mxu1 %v1150_v26  ;;  %v607_v29 = vld [vmem:[%s2141_s3 + $0x70] sm:$0xff] }
  0x7e   :  { %1089 = vmatprep.subr.bf16.mxu0 %v1088_v30  ;;  %v608_v30 = vld [vmem:[%s2141_s3 + $0x78] sm:$0xff] }
  0x7f   :  { %v1154_v31 = vpack.c.bf16 %v608_v30, %v607_v29 }
  0x81   :  { %1091 = vmatpush1.bf16.msra.mxu0 %v1090_v36  ;;  %v257_v36 = vsub.s32 0, %v1330_v35  ;;  %v705_v35 = vld [vmem:[%s2143_s5 + $0x10] sm:$0xff] }
  0x82   :  { %1093 = vmatprep.subr.bf16.mxu0 %v1092_v38  ;;  %v253_v38 = vld [vmem:[%s2140_s2] sm:$0x3] }
  0x83   :  { %v258_v40 = vrot.slane %v253_v38, %v257_v36  ;;  %v262_v41 = vrot.slane %v253_v38, %v261_v39 }
  0x84   :  { %514 = vmatmul.mubr.f32.vlgmr.msra.gmra.mrb[0].mxu0 %v1601_v47  ;;  %v236_v47 = vld [vmem:[%s2139_s1 + $0x678] sm:$0xff] }
  0x85   :  { %1095 = vmatpush1.bf16.msra.mxu0 %v1094_v44  ;;  %584 = vmatprep.mubr.f32.mxu0 %v1220_v51  ;;  %v1104_v57 = vpack.c.bf16 %v236_v47, %v234_v55  ;;  %v706_v55 = vld [vmem:[%s2143_s5 + $0x18] sm:$0xff] }
  0x86   :  { %1097 = vmatprep.subr.bf16.mxu0 %v1096_v45  ;;  %v1160_v47 = vpack.c.bf16 %v706_v55, %v705_v35 }
  0x89   :  { %1099 = vmatpush1.bf16.msra.mxu0 %v1098_v50 }
  0x8a   :  { %1101 = vmatprep.subr.bf16.mxu0 %v1100_v53 }
  0x8d   :  { %1103 = vmatpush1.bf16.msra.mxu0 %v1102_v56  ;;  %v707_v56 = vld [vmem:[%s2143_s5 + $0x20] sm:$0xff] }
  0x8e   :  { %1105 = vmatprep.subr.bf16.mxu0 %v1104_v57  ;;  %v708_v57 = vld [vmem:[%s2143_s5 + $0x28] sm:$0xff] }
  0x8f   :  { %v1163_v58 = vpack.c.bf16 %v708_v57, %v707_v56 }
  0x91   :  { %1107 = vmatpush1.bf16.msra.mxu0 %v1106_v63  ;;  %v711_v63 = vld [vmem:[%s2143_s5 + $0x40] sm:$0xff] }
  0x92   :  { %1109 = vmatprep.subr.bf16.mxu0 %v1108_v0  ;;  %v712_v0 = vld [vmem:[%s2143_s5 + $0x48] sm:$0xff] }
  0x93   :  { %v1169_v1 = vpack.c.bf16 %v712_v0, %v711_v63 }
  0x95   :  { %1111 = vmatpush1.bf16.msra.mxu0 %v1110_v5  ;;  %v715_v5 = vld [vmem:[%s2143_s5 + $0x60] sm:$0xff] }
  0x96   :  { %1113 = vmatprep.subr.bf16.mxu0 %v1112_v6  ;;  %v716_v6 = vld [vmem:[%s2143_s5 + $0x68] sm:$0xff]  ;;  %s1223_s5 = smov [#allocation2]  }
  0x97   :  { %v1175_v7 = vpack.c.bf16 %v716_v6, %v715_v5  ;;  %s803_s28 = sshll.u32 %s1223_s5, 4  ;;  %s804_s28 = int_to_ptr.vmem [resolvable:$true] %s803_s28 }
  0x98   :  { %s1195_s29 = scalar_lea.vmem %s804_s28, 32  ;;  %p1200_p1 = scmp.lt.s32.totalorder %s804_s28, %s804_s28 }
  0x99   :  { %1115 = vmatpush1.bf16.msra.mxu0 %v1114_v10  ;;  %p1196_p0 = scmp.ne.s32.totalorder %s804_s28, %s1195_s29  ;;  %p1201_p2 = scmp.lt.s32.totalorder %s1195_s29, %s1195_s29 }
  0x9a   :  { %1117 = vmatprep.subr.bf16.mxu0 %v1116_v11  ;;  %v811_v11 = vld [vmem:[%s2142_s4] ss:$0 sm:$0xff] }
  0x9b   :  { %p1202_p3 = por %p1201_p2, %p1200_p1 }
  0x9d   :  { %1119 = vmatpush1.bf16.msra.mxu0 %v1118_v16  ;;  %v812_v16 = vld [vmem:[%s2144_s6] ss:$0 sm:$0xff]  ;;  %p1203_p4 = pnand %p1202_p3, %p1196_p0 }
  0x9e   :  { %1121 = vmatprep.subr.bf16.mxu0 %v1120_v17 }
  0xa1   :  { %1123 = vmatpush1.bf16.msra.mxu0 %v1122_v20 }
  0xa4   :  { %585 = vmatmul.mubr.f32.vlgmr.msra.gmra.mrb[0].mxu0 %v1586_v37  ;;  %v623_v37 = vld [vmem:[%s2141_s3 + $0xf0] sm:$0xff] }
  0xa5   :  { %v1152_v28 = vpack.c.bf16 %v624_v27, %v623_v37 }
  0xa7   :  { %1153 = vmatprep.subr.bf16.mxu1 %v1152_v28 }
  0xa8   :  { %1155 = vmatpush3.bf16.msra.mxu1 %v1154_v31 }
  0xa9   :  { %1156 = vmatprep.subr.bf16.mxu1 %v1221_v32 }
 0x135   :  { %v373_v33 = vpop.f32.mrb[0].mxu1 }
 0x136   :  { %v375_v34 = vpop.f32.mrb[1].mxu1  ;;  %v374_v42 = vadd.f32 %v373_v33, %v258_v40 }
 0x137   :  { %v376_v44 = vadd.f32 %v375_v34, %v262_v41 }
 0x177   :  { %v586_v45 = vpop.f32.mrb[0].mxu0 }
 0x178   :  { %v1181_v59 = vadd.f32 %v586_v45, %v374_v42  ;;  %v588_v46 = vpop.f32.mrb[1].mxu0 }
 0x179   :  { %v1183_v50 = vadd.f32 %v588_v46, %v376_v44 }
 0x17a   :  { %v591_v54 = vmax.f32 %v1181_v59, 0.0 }
 0x17b   :  { %v592_v53 = vmax.f32 %v1183_v50, 0.0 }
 0x17d   :  { %696 = vmatprep.mubr.f32.mxu1 %v592_v53 }
 0x17e   :  { %697 = vmatmul.mubr.f32.vlgmr.msra.gmra.mrb[2].mxu1 %v591_v54 }
 0x17f   :  { %1158 = vmatpush3.bf16.msra.mxu1 %v1157_v43  ;;  %897 = vmatprep.mubr.msk.f32.mxu1 %vm1222_vm0, %v1220_v51 }
 0x180   :  { %1159 = vmatprep.subr.bf16.mxu1 %v1221_v32 }
 0x183   :  { %1161 = vmatpush3.bf16.msra.mxu1 %v1160_v47 }
 0x184   :  { %1162 = vmatprep.subr.bf16.mxu1 %v1221_v32 }
 0x187   :  { %1164 = vmatpush3.bf16.msra.mxu1 %v1163_v58 }
 0x188   :  { %1165 = vmatprep.subr.bf16.mxu1 %v1221_v32 }
 0x18b   :  { %1167 = vmatpush3.bf16.msra.mxu1 %v1166_v62 }
 0x18c   :  { %1168 = vmatprep.subr.bf16.mxu1 %v1221_v32 }
 0x18f   :  { %1170 = vmatpush3.bf16.msra.mxu1 %v1169_v1 }
 0x190   :  { %1171 = vmatprep.subr.bf16.mxu1 %v1221_v32 }
 0x193   :  { %1173 = vmatpush3.bf16.msra.mxu1 %v1172_v4 }
 0x194   :  { %1174 = vmatprep.subr.bf16.mxu1 %v1221_v32 }
 0x197   :  { %1176 = vmatpush3.bf16.msra.mxu1 %v1175_v7 }
 0x198   :  { %1177 = vmatprep.subr.bf16.mxu1 %v1221_v32 }
 0x19b   :  { %1179 = vmatpush3.bf16.msra.mxu1 %v1178_v9 }
 0x251   :  { %v845_v10 = vpop.f32.mrb[2].mxu1 }
 0x252   :  { %v846_v12 = vpop.f32.mrb[3].mxu1 }
 0x253   :  { %v847_v13 = vadd.f32 %v846_v12, %v845_v10 }
 0x255   :  { %v699_v14 = vadd.f32 %v847_v13, %v811_v11 }
 0x257   :  { %v702_v15 = vmax.f32 %v699_v14, 0.0 }
 0x259   :  { %898 = vmatmul.mubr.f32.vlgmr.msra.gmra.mrb[4].mxu1 %v702_v15 }
 0x32c   :  { %v792_v17 = vpop.f32.mrb[4].mxu1 }
 0x32d   :  { %v793_v18 = vadd.f32 %v812_v16, %v792_v17  ;;  %v899_v19 = vpop.f32.mrb[5].mxu1 }
 0x32f   :  { %796 = vst [vmem:[#allocation2] sm:$0x3] %v793_v18 }
 0x330   :  { %1206 = shalt.err (!%p1203_p4)
}
 0x331   :  { %s1207_s8 = scalar_lea.hbm %s2145_s7, 32 }
 0x332   :  { %p1208_p5 = scmp.ne.s32.totalorder %s2145_s7, %s1207_s8  ;;  %p1211_p6 = scmp.lt.u32.totalorder %s1207_s8, %s2145_s7 }
 0x334   :  { %p1213_p7 = pnand %p1211_p6, %p1208_p5 }
 0x336   :  { %1216 = shalt.err (!%p1213_p7)
}
 0x337   :  { %806 = dma.vmem_to_hbm [thread:$0]  %s804_s28, 32, %s2145_s7, [#allocation3]  }
 0x338   :  { %1217 = dma.done.wait [#allocation3], 32  }
 0x339   :  { %1218 = vsyncadd [#allocation3], 4294967264 }
 0x33a   :  { %810 = vsyncpa [#allocation3], 1 }

</bundles_post_ra>
